<compile_context>
chip_gen: v5e
topology: v5e:2x2
jax: 0.10.0
libtpu: 0.0.40
codegen_flags: <defaults>
</compile_context>

<pallas_src>
import jax
import jax.numpy as jnp
from jax.experimental import pallas as pl
from jax.experimental.pallas import tpu as pltpu

# ----- "opt" hyper-parameters (small demo sizes consistent with the module)
IMG_SIZE = 16                 # must be divisible by 16 (four stride-2 convs)
N_CLASSES = 10
CHANNELS = 3
BATCH = 2
DS_SIZE = IMG_SIZE // (2 ** 4)
BN_EPS = 0.8                  # nn.BatchNorm2d(out_filters, 0.8): 2nd positional arg is eps
LRELU_SLOPE = 0.2


def _vmem():
    return pl.BlockSpec(memory_space=pltpu.MemorySpace.VMEM)


# --------------------------- Pallas kernels ----------------------------------

def _linear_kernel(x_ref, w_ref, b_ref, o_ref):
    # x: (B, Din), w: (Din, Dout) pre-transposed at init, b: (1, Dout)
    o_ref[...] = (
        jnp.dot(x_ref[...], w_ref[...], preferred_element_type=jnp.float32)
        + b_ref[...]
    )


def pallas_linear(x, w, b):
    B, Dout = x.shape[0], w.shape[1]
    return pl.pallas_call(
        _linear_kernel,
        out_shape=jax.ShapeDtypeStruct((B, Dout), jnp.float32),
        in_specs=[_vmem(), _vmem(), _vmem()],
        out_specs=_vmem(),
    )(x, w, b.reshape(1, -1))


def _make_block_kernel(OH, OW, Cout, apply_bn, with_head):
    """Fused Conv(k4,s2,p1) + LeakyReLU + [BatchNorm] + [flatten+Linear+Sigmoid]."""

    def kernel(*refs):
        it = iter(refs)
        x_ref = next(it)           # (Bb, OH+1, OW+1, 4*Cin)  space-to-depth input
        w_ref = next(it)           # (2, 2, 4*Cin, Cout)      phase-packed weight
        b_ref = next(it)           # (1, Cout)
        if apply_bn:
            g_ref = next(it)       # (1, Cout)
            bt_ref = next(it)      # (1, Cout)
        if with_head:
            hw_ref = next(it)      # (OH*OW*Cout, 1)  adv weight, (h,w,c) order
            hb_ref = next(it)      # (1, 1)
        o_ref = next(it)

        Bb = x_ref.shape[0]
        C4 = x_ref.shape[3]
        M = Bb * OH * OW
        x = x_ref[...]

        # Phase-decomposed stride-2 conv: 4 stride-1 taps, back-to-back dots
        # into one f32 accumulator (no interleaved VPU work between taps).
        acc = jnp.zeros((M, Cout), jnp.float32)
        for dh in range(2):
            for dw in range(2):
                tap = x[:, dh:dh + OH, dw:dw + OW, :].reshape(M, C4)
                acc = acc + jnp.dot(tap, w_ref[dh, dw],
                                    preferred_element_type=jnp.float32)

        acc = acc + b_ref[...]
        acc = jnp.maximum(acc, LRELU_SLOPE * acc)       # LeakyReLU(0.2)
        # TODO(synk): Dropout2d(0.25) is identity here (inference behaviour);
        # training-mode channel dropout would need in-kernel PRNG.

        if apply_bn:
            # One-pass batch statistics over (B, OH, OW) per channel
            # (training-mode BatchNorm2d, biased variance, eps = 0.8).
            inv_n = 1.0 / float(M)
            s = jnp.sum(acc, axis=0, keepdims=True)
            ss = jnp.sum(acc * acc, axis=0, keepdims=True)
            mean = s * inv_n
            var = ss * inv_n - mean * mean
            acc = (acc - mean) * jax.lax.rsqrt(var + BN_EPS) * g_ref[...] + bt_ref[...]

        if with_head:
            # Fused flatten + adv Linear + Sigmoid.  acc rows are ordered
            # (b, oh, ow); the adv weight was permuted to (h, w, c) order at init.
            feats = acc.reshape(Bb, OH * OW * Cout)
            logit = jnp.dot(feats, hw_ref[...],
                            preferred_element_type=jnp.float32) + hb_ref[...]
            o_ref[...] = 1.0 / (1.0 + jnp.exp(-logit))
        else:
            o_ref[...] = acc.reshape(Bb, OH, OW, Cout)

    return kernel


# --------------------------- wrappers -----------------------------------------

def _space_to_depth_pad1(x):
    """Pad NHWC input by 1 and repack 2x2 spatial phases into channels (layout glue)."""
    B, H, W, C = x.shape
    xp = jnp.pad(x, ((0, 0), (1, 1), (1, 1), (0, 0)))
    Hp, Wp = H + 2, W + 2
    xs = xp.reshape(B, Hp // 2, 2, Wp // 2, 2, C)
    xs = jnp.transpose(xs, (0, 1, 3, 2, 4, 5))          # (B, Hp/2, Wp/2, ph, pw, C)
    return xs.reshape(B, Hp // 2, Wp // 2, 4 * C)


def pallas_disc_block(x, w2, b, gamma=None, beta=None, head_w=None, head_b=None,
                      *, grid_over_batch=False):
    """One discriminator block on NHWC input x."""
    B, H, W, _ = x.shape
    OH, OW = H // 2, W // 2
    Cout = w2.shape[-1]
    apply_bn = gamma is not None
    with_head = head_w is not None

    xs = _space_to_depth_pad1(x)                        # (B, OH+1, OW+1, 4*Cin)
    kernel = _make_block_kernel(OH, OW, Cout, apply_bn, with_head)

    inputs = [xs, w2, b.reshape(1, -1)]
    if apply_bn:
        inputs += [gamma.reshape(1, -1), beta.reshape(1, -1)]
    if with_head:
        inputs += [head_w, head_b.reshape(1, 1)]

    if with_head:
        out_shape = jax.ShapeDtypeStruct((B, 1), jnp.float32)
    else:
        out_shape = jax.ShapeDtypeStruct((B, OH, OW, Cout), jnp.float32)

    if grid_over_batch and not apply_bn and not with_head:
        # Grid over batch: double-buffered DMA/compute overlap, and the
        # "parallel" axis lets the two v7x TensorCores split the work.
        Hs, Ws, C4 = xs.shape[1], xs.shape[2], xs.shape[3]
        return pl.pallas_call(
            kernel,
            grid=(B,),
            out_shape=out_shape,
            in_specs=[
                pl.BlockSpec((1, Hs, Ws, C4), lambda i: (i, 0, 0, 0)),
                pl.BlockSpec(w2.shape, lambda i: (0, 0, 0, 0)),     # weights resident
                pl.BlockSpec((1, Cout), lambda i: (0, 0)),
            ],
            out_specs=pl.BlockSpec((1, OH, OW, Cout), lambda i: (i, 0, 0, 0)),
            compiler_params=pltpu.CompilerParams(
                dimension_semantics=("parallel",)),
        )(*inputs)

    # Blocks with batch-stat BatchNorm need the whole batch in one program
    # (global (B,H,W) reduction); activations here are at most a few hundred KB.
    # TODO(synk): for large batches, split into a stats kernel + gridded apply.
    return pl.pallas_call(
        kernel,
        out_shape=out_shape,
        in_specs=[_vmem()] * len(inputs),
        out_specs=_vmem(),
    )(*inputs)


# --------------------------- parameters ---------------------------------------

def _pack_conv_weight(w_pt):
    """PyTorch Conv2d weight (Cout, Cin, 4, 4) -> phase form (2, 2, 4*Cin, Cout)."""
    Cout, Cin = w_pt.shape[0], w_pt.shape[1]
    w_hwio = jnp.transpose(w_pt, (2, 3, 1, 0))           # (kh, kw, Cin, Cout)
    w_ph = w_hwio.reshape(2, 2, 2, 2, Cin, Cout)         # (dh, ph, dw, pw, Cin, Cout)
    w_ph = jnp.transpose(w_ph, (0, 2, 1, 3, 4, 5))       # (dh, dw, ph, pw, Cin, Cout)
    return w_ph.reshape(2, 2, 4 * Cin, Cout)


def _pack_adv_weight(w_pt, C, ds):
    """PyTorch Linear weight (1, C*ds*ds) (c,h,w order) -> (ds*ds*C, 1) (h,w,c order)."""
    w = w_pt.reshape(C, ds, ds)
    w = jnp.transpose(w, (1, 2, 0))
    return w.reshape(ds * ds * C, 1)


def init_params(key):
    ks = jax.random.split(key, 24)
    p = {}
    # l1 = Embedding(n_classes, n_classes) + Linear(n_classes, img_size**2)
    p["emb"] = 0.1 * jax.random.normal(ks[0], (N_CLASSES, N_CLASSES), jnp.float32)
    l1_w_pt = 0.05 * jax.random.normal(
        ks[1], (IMG_SIZE * IMG_SIZE, N_CLASSES), jnp.float32)   # PyTorch (out, in)
    p["l1_w"] = jnp.transpose(l1_w_pt)                          # hoisted: (in, out)
    p["l1_b"] = 0.05 * jax.random.normal(ks[2], (IMG_SIZE * IMG_SIZE,), jnp.float32)

    # discriminator_block(in, out, bn): Conv(k4,s2,p1) -> LeakyReLU -> Dropout -> [BN]
    chans = [(CHANNELS + 1, 16, False), (16, 32, True), (32, 64, True), (64, 128, True)]
    for i, (cin, cout, bn) in enumerate(chans):
        w_pt = 0.05 * jax.random.normal(ks[3 + 4 * i], (cout, cin, 4, 4), jnp.float32)
        p[f"c{i}_w2"] = _pack_conv_weight(w_pt)                 # hoisted layout transform
        p[f"c{i}_b"] = 0.05 * jax.random.normal(ks[4 + 4 * i], (cout,), jnp.float32)
        if bn:
            p[f"bn{i}_g"] = 1.0 + 0.1 * jax.random.normal(ks[5 + 4 * i], (cout,), jnp.float32)
            p[f"bn{i}_b"] = 0.1 * jax.random.normal(ks[6 + 4 * i], (cout,), jnp.float32)

    # adv_layer: Linear(128 * ds**2, 1) + Sigmoid (weight pre-permuted to NHWC order)
    adv_w_pt = 0.05 * jax.random.normal(ks[19], (1, 128 * DS_SIZE * DS_SIZE), jnp.float32)
    p["adv_w"] = _pack_adv_weight(adv_w_pt, 128, DS_SIZE)
    p["adv_b"] = 0.05 * jax.random.normal(ks[20], (1,), jnp.float32)
    return p


# --------------------------- forward -------------------------------------------

@jax.jit
def discriminator_forward(params, img, condition):
    B = img.shape[0]
    # l1: embedding lookup (gather = glue) + Linear (Pallas matmul)
    emb = params["emb"][condition]                               # (B, n_classes)
    cond = pallas_linear(emb, params["l1_w"], params["l1_b"])    # (B, img_size**2)
    cond = cond.reshape(B, IMG_SIZE, IMG_SIZE, 1)                # == torch .view, 1 channel

    img_nhwc = jnp.transpose(img, (0, 2, 3, 1))                  # NCHW -> NHWC (once)
    x = jnp.concatenate([img_nhwc, cond], axis=-1)               # cat dim=1 in NCHW

    # block 1: Conv(4->16) + LeakyReLU (no BN) — gridded over batch, "parallel"
    x = pallas_disc_block(x, params["c0_w2"], params["c0_b"], grid_over_batch=True)
    # blocks 2-3: fused Conv + LeakyReLU + BatchNorm (batch stats, eps=0.8)
    x = pallas_disc_block(x, params["c1_w2"], params["c1_b"],
                          params["bn1_g"], params["bn1_b"])
    x = pallas_disc_block(x, params["c2_w2"], params["c2_b"],
                          params["bn2_g"], params["bn2_b"])
    # block 4: fused Conv + LeakyReLU + BatchNorm + flatten + adv Linear + Sigmoid
    validity = pallas_disc_block(x, params["c3_w2"], params["c3_b"],
                                 params["bn3_g"], params["bn3_b"],
                                 params["adv_w"], params["adv_b"])
    return validity                                              # (B, 1)


if __name__ == "__main__":
    key = jax.random.PRNGKey(0)
    pkey, ikey, ckey = jax.random.split(key, 3)

    params = init_params(pkey)
    img = jax.random.normal(ikey, (BATCH, CHANNELS, IMG_SIZE, IMG_SIZE), jnp.float32)
    condition = jax.random.randint(ckey, (BATCH,), 0, N_CLASSES)

    validity = discriminator_forward(params, img, condition)
    jax.block_until_ready(validity)
    assert validity.shape == (BATCH, 1)
    assert validity.dtype == jnp.float32
    assert bool(jnp.all(jnp.isfinite(validity)))
    assert bool(jnp.all((validity >= 0.0) & (validity <= 1.0)))
    print("KERNEL_OK")
</pallas_src>

<mosaic_0001>
module attributes {stable_mosaic.version = 11 : i64} {
  func.func @_linear_kernel(%arg0: memref<2x10xf32, #tpu.memory_space<vmem>>, %arg1: memref<10x256xf32, #tpu.memory_space<vmem>>, %arg2: memref<1x256xf32, #tpu.memory_space<vmem>>, %arg3: memref<2x256xf32, #tpu.memory_space<vmem>>) attributes {dimension_semantics = [], scalar_prefetch = 0 : i64, scratch_operands = 0 : i64, tpu.core_type = #tpu.core_type<tc>} {
    %c0 = arith.constant 0 : index
    %c0_0 = arith.constant 0 : index
    %0 = vector.load %arg0[%c0, %c0_0] : memref<2x10xf32, #tpu.memory_space<vmem>>, vector<2x10xf32>
    %c0_1 = arith.constant 0 : index
    %c0_2 = arith.constant 0 : index
    %1 = vector.load %arg1[%c0_1, %c0_2] : memref<10x256xf32, #tpu.memory_space<vmem>>, vector<10x256xf32>
    %cst = arith.constant dense<0.000000e+00> : vector<2x256xf32>
    %2 = tpu.matmul %0, %1, %cst {dimension_numbers = #tpu.dot_dimension_numbers<[1], [0], [0], [1], [0, 0, 1, 1], [], []>} : vector<2x10xf32>, vector<10x256xf32>, vector<2x256xf32> -> vector<2x256xf32>
    %c0_3 = arith.constant 0 : index
    %c0_4 = arith.constant 0 : index
    %3 = vector.load %arg2[%c0_3, %c0_4] : memref<1x256xf32, #tpu.memory_space<vmem>>, vector<1x256xf32>
    %4 = vector.broadcast %3 : vector<1x256xf32> to vector<2x256xf32>
    %5 = arith.addf %2, %4 : vector<2x256xf32>
    %c0_5 = arith.constant 0 : index
    %c0_6 = arith.constant 0 : index
    %6 = vector.load %arg3[%c0_5, %c0_6] : memref<2x256xf32, #tpu.memory_space<vmem>>, vector<2x256xf32>
    tpu.vector_store %arg3[%c0_5, %c0_6], %5 {strides = array<i32>} : memref<2x256xf32, #tpu.memory_space<vmem>>, vector<2x256xf32>,
    return
  }
}

module attributes {stable_mosaic.version = 11 : i64} {
  func.func @kernel(%arg0: i32, %arg1: memref<1x9x9x16xf32, #tpu.memory_space<vmem>>, %arg2: memref<2x2x16x16xf32, #tpu.memory_space<vmem>>, %arg3: memref<1x16xf32, #tpu.memory_space<vmem>>, %arg4: memref<1x8x8x16xf32, #tpu.memory_space<vmem>>) attributes {dimension_semantics = [#tpu.dimension_semantics<parallel>], iteration_bounds = array<i64: 2>, scalar_prefetch = 0 : i64, scratch_operands = 0 : i64, tpu.core_type = #tpu.core_type<tc>, window_params = [{transform_indices = @transform_0, window_bounds = array<i64: 1, 9, 9, 16>}, {pipeline_mode = #tpu.pipeline_mode<synchronous>, transform_indices = @transform_1, window_bounds = array<i64: 2, 2, 16, 16>}, {pipeline_mode = #tpu.pipeline_mode<synchronous>, transform_indices = @transform_2, window_bounds = array<i64: 1, 16>}, {transform_indices = @transform_3, window_bounds = array<i64: 1, 8, 8, 16>}]} {
    %c0 = arith.constant 0 : index
    %c0_0 = arith.constant 0 : index
    %c0_1 = arith.constant 0 : index
    %c0_2 = arith.constant 0 : index
    %0 = vector.load %arg1[%c0, %c0_0, %c0_1, %c0_2] : memref<1x9x9x16xf32, #tpu.memory_space<vmem>>, vector<1x9x9x16xf32>
    %cst = arith.constant 0.000000e+00 : f32
    %1 = vector.broadcast %cst : f32 to vector<64x16xf32>
    %2 = vector.extract_strided_slice %0 {offsets = [0, 0, 0, 0], sizes = [1, 8, 8, 16], strides = [1, 1, 1, 1]} : vector<1x9x9x16xf32> to vector<1x8x8x16xf32>
    %3 = vector.shape_cast %2 : vector<1x8x8x16xf32> to vector<64x16xf32>
    %c0_3 = arith.constant 0 : index
    %c0_4 = arith.constant 0 : index
    %c0_5 = arith.constant 0 : index
    %c0_6 = arith.constant 0 : index
    %4 = vector.load %arg2[%c0_3, %c0_4, %c0_5, %c0_6] : memref<2x2x16x16xf32, #tpu.memory_space<vmem>>, vector<1x1x16x16xf32>
    %5 = vector.shape_cast %4 : vector<1x1x16x16xf32> to vector<16x16xf32>
    %cst_7 = arith.constant dense<0.000000e+00> : vector<64x16xf32>
    %6 = tpu.matmul %3, %5, %cst_7 {dimension_numbers = #tpu.dot_dimension_numbers<[1], [0], [0], [1], [0, 0, 1, 1], [], []>} : vector<64x16xf32>, vector<16x16xf32>, vector<64x16xf32> -> vector<64x16xf32>
    %7 = arith.addf %1, %6 : vector<64x16xf32>
    %8 = vector.extract_strided_slice %0 {offsets = [0, 0, 1, 0], sizes = [1, 8, 8, 16], strides = [1, 1, 1, 1]} : vector<1x9x9x16xf32> to vector<1x8x8x16xf32>
    %9 = vector.shape_cast %8 : vector<1x8x8x16xf32> to vector<64x16xf32>
    %c0_8 = arith.constant 0 : index
    %c1 = arith.constant 1 : index
    %c0_9 = arith.constant 0 : index
    %c0_10 = arith.constant 0 : index
    %10 = vector.load %arg2[%c0_8, %c1, %c0_9, %c0_10] : memref<2x2x16x16xf32, #tpu.memory_space<vmem>>, vector<1x1x16x16xf32>
    %11 = vector.shape_cast %10 : vector<1x1x16x16xf32> to vector<16x16xf32>
    %cst_11 = arith.constant dense<0.000000e+00> : vector<64x16xf32>
    %12 = tpu.matmul %9, %11, %cst_11 {dimension_numbers = #tpu.dot_dimension_numbers<[1], [0], [0], [1], [0, 0, 1, 1], [], []>} : vector<64x16xf32>, vector<16x16xf32>, vector<64x16xf32> -> vector<64x16xf32>
    %13 = arith.addf %7, %12 : vector<64x16xf32>
    %14 = vector.extract_strided_slice %0 {offsets = [0, 1, 0, 0], sizes = [1, 8, 8, 16], strides = [1, 1, 1, 1]} : vector<1x9x9x16xf32> to vector<1x8x8x16xf32>
    %15 = vector.shape_cast %14 : vector<1x8x8x16xf32> to vector<64x16xf32>
    %c1_12 = arith.constant 1 : index
    %c0_13 = arith.constant 0 : index
    %c0_14 = arith.constant 0 : index
    %c0_15 = arith.constant 0 : index
    %16 = vector.load %arg2[%c1_12, %c0_13, %c0_14, %c0_15] : memref<2x2x16x16xf32, #tpu.memory_space<vmem>>, vector<1x1x16x16xf32>
    %17 = vector.shape_cast %16 : vector<1x1x16x16xf32> to vector<16x16xf32>
    %cst_16 = arith.constant dense<0.000000e+00> : vector<64x16xf32>
    %18 = tpu.matmul %15, %17, %cst_16 {dimension_numbers = #tpu.dot_dimension_numbers<[1], [0], [0], [1], [0, 0, 1, 1], [], []>} : vector<64x16xf32>, vector<16x16xf32>, vector<64x16xf32> -> vector<64x16xf32>
    %19 = arith.addf %13, %18 : vector<64x16xf32>
    %20 = vector.extract_strided_slice %0 {offsets = [0, 1, 1, 0], sizes = [1, 8, 8, 16], strides = [1, 1, 1, 1]} : vector<1x9x9x16xf32> to vector<1x8x8x16xf32>
    %21 = vector.shape_cast %20 : vector<1x8x8x16xf32> to vector<64x16xf32>
    %c1_17 = arith.constant 1 : index
    %c1_18 = arith.constant 1 : index
    %c0_19 = arith.constant 0 : index
    %c0_20 = arith.constant 0 : index
    %22 = vector.load %arg2[%c1_17, %c1_18, %c0_19, %c0_20] : memref<2x2x16x16xf32, #tpu.memory_space<vmem>>, vector<1x1x16x16xf32>
    %23 = vector.shape_cast %22 : vector<1x1x16x16xf32> to vector<16x16xf32>
    %cst_21 = arith.constant dense<0.000000e+00> : vector<64x16xf32>
    %24 = tpu.matmul %21, %23, %cst_21 {dimension_numbers = #tpu.dot_dimension_numbers<[1], [0], [0], [1], [0, 0, 1, 1], [], []>} : vector<64x16xf32>, vector<16x16xf32>, vector<64x16xf32> -> vector<64x16xf32>
    %25 = arith.addf %19, %24 : vector<64x16xf32>
    %c0_22 = arith.constant 0 : index
    %c0_23 = arith.constant 0 : index
    %26 = vector.load %arg3[%c0_22, %c0_23] : memref<1x16xf32, #tpu.memory_space<vmem>>, vector<1x16xf32>
    %27 = vector.broadcast %26 : vector<1x16xf32> to vector<64x16xf32>
    %28 = arith.addf %25, %27 : vector<64x16xf32>
    %cst_24 = arith.constant 2.000000e-01 : f32
    %29 = vector.broadcast %cst_24 : f32 to vector<64x16xf32>
    %30 = arith.mulf %29, %28 : vector<64x16xf32>
    %31 = arith.maximumf %28, %30 : vector<64x16xf32>
    %32 = vector.shape_cast %31 : vector<64x16xf32> to vector<1x8x8x16xf32>
    %c0_25 = arith.constant 0 : index
    %c0_26 = arith.constant 0 : index
    %c0_27 = arith.constant 0 : index
    %c0_28 = arith.constant 0 : index
    %33 = vector.load %arg4[%c0_25, %c0_26, %c0_27, %c0_28] : memref<1x8x8x16xf32, #tpu.memory_space<vmem>>, vector<1x8x8x16xf32>
    tpu.vector_store %arg4[%c0_25, %c0_26, %c0_27, %c0_28], %32 {strides = array<i32>} : memref<1x8x8x16xf32, #tpu.memory_space<vmem>>, vector<1x8x8x16xf32>,
    return
  }
  func.func @transform_0(%arg0: i32) -> (i32, i32, i32, i32) {
    %c0_i32 = arith.constant 0 : i32
    %c0_i32_0 = arith.constant 0 : i32
    %c0_i32_1 = arith.constant 0 : i32
    %c0_i32_2 = arith.constant 0 : i32
    return %arg0, %c0_i32, %c0_i32_0, %c0_i32_1 : i32, i32, i32, i32
  }
  func.func @transform_1(%arg0: i32) -> (i32, i32, i32, i32) {
    %c0_i32 = arith.constant 0 : i32
    %c0_i32_0 = arith.constant 0 : i32
    %c0_i32_1 = arith.constant 0 : i32
    %c0_i32_2 = arith.constant 0 : i32
    %c0_i32_3 = arith.constant 0 : i32
    return %c0_i32, %c0_i32_0, %c0_i32_1, %c0_i32_2 : i32, i32, i32, i32
  }
  func.func @transform_2(%arg0: i32) -> (i32, i32) {
    %c0_i32 = arith.constant 0 : i32
    %c0_i32_0 = arith.constant 0 : i32
    %c0_i32_1 = arith.constant 0 : i32
    return %c0_i32, %c0_i32_0 : i32, i32
  }
  func.func @transform_3(%arg0: i32) -> (i32, i32, i32, i32) {
    %c0_i32 = arith.constant 0 : i32
    %c0_i32_0 = arith.constant 0 : i32
    %c0_i32_1 = arith.constant 0 : i32
    %c0_i32_2 = arith.constant 0 : i32
    return %arg0, %c0_i32, %c0_i32_0, %c0_i32_1 : i32, i32, i32, i32
  }
}

module attributes {stable_mosaic.version = 11 : i64} {
  func.func @kernel(%arg0: memref<2x5x5x64xf32, #tpu.memory_space<vmem>>, %arg1: memref<2x2x64x32xf32, #tpu.memory_space<vmem>>, %arg2: memref<1x32xf32, #tpu.memory_space<vmem>>, %arg3: memref<1x32xf32, #tpu.memory_space<vmem>>, %arg4: memref<1x32xf32, #tpu.memory_space<vmem>>, %arg5: memref<2x4x4x32xf32, #tpu.memory_space<vmem>>) attributes {dimension_semantics = [], scalar_prefetch = 0 : i64, scratch_operands = 0 : i64, tpu.core_type = #tpu.core_type<tc>} {
    %c0 = arith.constant 0 : index
    %c0_0 = arith.constant 0 : index
    %c0_1 = arith.constant 0 : index
    %c0_2 = arith.constant 0 : index
    %0 = vector.load %arg0[%c0, %c0_0, %c0_1, %c0_2] : memref<2x5x5x64xf32, #tpu.memory_space<vmem>>, vector<2x5x5x64xf32>
    %cst = arith.constant 0.000000e+00 : f32
    %1 = vector.broadcast %cst : f32 to vector<32x32xf32>
    %2 = vector.extract_strided_slice %0 {offsets = [0, 0, 0, 0], sizes = [2, 4, 4, 64], strides = [1, 1, 1, 1]} : vector<2x5x5x64xf32> to vector<2x4x4x64xf32>
    %3 = vector.shape_cast %2 : vector<2x4x4x64xf32> to vector<32x64xf32>
    %c0_3 = arith.constant 0 : index
    %c0_4 = arith.constant 0 : index
    %c0_5 = arith.constant 0 : index
    %c0_6 = arith.constant 0 : index
    %4 = vector.load %arg1[%c0_3, %c0_4, %c0_5, %c0_6] : memref<2x2x64x32xf32, #tpu.memory_space<vmem>>, vector<1x1x64x32xf32>
    %5 = vector.shape_cast %4 : vector<1x1x64x32xf32> to vector<64x32xf32>
    %cst_7 = arith.constant dense<0.000000e+00> : vector<32x32xf32>
    %6 = tpu.matmul %3, %5, %cst_7 {dimension_numbers = #tpu.dot_dimension_numbers<[1], [0], [0], [1], [0, 0, 1, 1], [], []>} : vector<32x64xf32>, vector<64x32xf32>, vector<32x32xf32> -> vector<32x32xf32>
    %7 = arith.addf %1, %6 : vector<32x32xf32>
    %8 = vector.extract_strided_slice %0 {offsets = [0, 0, 1, 0], sizes = [2, 4, 4, 64], strides = [1, 1, 1, 1]} : vector<2x5x5x64xf32> to vector<2x4x4x64xf32>
    %9 = vector.shape_cast %8 : vector<2x4x4x64xf32> to vector<32x64xf32>
    %c0_8 = arith.constant 0 : index
    %c1 = arith.constant 1 : index
    %c0_9 = arith.constant 0 : index
    %c0_10 = arith.constant 0 : index
    %10 = vector.load %arg1[%c0_8, %c1, %c0_9, %c0_10] : memref<2x2x64x32xf32, #tpu.memory_space<vmem>>, vector<1x1x64x32xf32>
    %11 = vector.shape_cast %10 : vector<1x1x64x32xf32> to vector<64x32xf32>
    %cst_11 = arith.constant dense<0.000000e+00> : vector<32x32xf32>
    %12 = tpu.matmul %9, %11, %cst_11 {dimension_numbers = #tpu.dot_dimension_numbers<[1], [0], [0], [1], [0, 0, 1, 1], [], []>} : vector<32x64xf32>, vector<64x32xf32>, vector<32x32xf32> -> vector<32x32xf32>
    %13 = arith.addf %7, %12 : vector<32x32xf32>
    %14 = vector.extract_strided_slice %0 {offsets = [0, 1, 0, 0], sizes = [2, 4, 4, 64], strides = [1, 1, 1, 1]} : vector<2x5x5x64xf32> to vector<2x4x4x64xf32>
    %15 = vector.shape_cast %14 : vector<2x4x4x64xf32> to vector<32x64xf32>
    %c1_12 = arith.constant 1 : index
    %c0_13 = arith.constant 0 : index
    %c0_14 = arith.constant 0 : index
    %c0_15 = arith.constant 0 : index
    %16 = vector.load %arg1[%c1_12, %c0_13, %c0_14, %c0_15] : memref<2x2x64x32xf32, #tpu.memory_space<vmem>>, vector<1x1x64x32xf32>
    %17 = vector.shape_cast %16 : vector<1x1x64x32xf32> to vector<64x32xf32>
    %cst_16 = arith.constant dense<0.000000e+00> : vector<32x32xf32>
    %18 = tpu.matmul %15, %17, %cst_16 {dimension_numbers = #tpu.dot_dimension_numbers<[1], [0], [0], [1], [0, 0, 1, 1], [], []>} : vector<32x64xf32>, vector<64x32xf32>, vector<32x32xf32> -> vector<32x32xf32>
    %19 = arith.addf %13, %18 : vector<32x32xf32>
    %20 = vector.extract_strided_slice %0 {offsets = [0, 1, 1, 0], sizes = [2, 4, 4, 64], strides = [1, 1, 1, 1]} : vector<2x5x5x64xf32> to vector<2x4x4x64xf32>
    %21 = vector.shape_cast %20 : vector<2x4x4x64xf32> to vector<32x64xf32>
    %c1_17 = arith.constant 1 : index
    %c1_18 = arith.constant 1 : index
    %c0_19 = arith.constant 0 : index
    %c0_20 = arith.constant 0 : index
    %22 = vector.load %arg1[%c1_17, %c1_18, %c0_19, %c0_20] : memref<2x2x64x32xf32, #tpu.memory_space<vmem>>, vector<1x1x64x32xf32>
    %23 = vector.shape_cast %22 : vector<1x1x64x32xf32> to vector<64x32xf32>
    %cst_21 = arith.constant dense<0.000000e+00> : vector<32x32xf32>
    %24 = tpu.matmul %21, %23, %cst_21 {dimension_numbers = #tpu.dot_dimension_numbers<[1], [0], [0], [1], [0, 0, 1, 1], [], []>} : vector<32x64xf32>, vector<64x32xf32>, vector<32x32xf32> -> vector<32x32xf32>
    %25 = arith.addf %19, %24 : vector<32x32xf32>
    %c0_22 = arith.constant 0 : index
    %c0_23 = arith.constant 0 : index
    %26 = vector.load %arg2[%c0_22, %c0_23] : memref<1x32xf32, #tpu.memory_space<vmem>>, vector<1x32xf32>
    %27 = vector.broadcast %26 : vector<1x32xf32> to vector<32x32xf32>
    %28 = arith.addf %25, %27 : vector<32x32xf32>
    %cst_24 = arith.constant 2.000000e-01 : f32
    %29 = vector.broadcast %cst_24 : f32 to vector<32x32xf32>
    %30 = arith.mulf %29, %28 : vector<32x32xf32>
    %31 = arith.maximumf %28, %30 : vector<32x32xf32>
    %cst_25 = arith.constant dense<0.000000e+00> : vector<32xf32>
    %32 = vector.multi_reduction <add>, %31, %cst_25 [0] : vector<32x32xf32> to vector<32xf32>
    %33 = vector.shape_cast %32 : vector<32xf32> to vector<1x32xf32>
    %34 = arith.mulf %31, %31 : vector<32x32xf32>
    %cst_26 = arith.constant dense<0.000000e+00> : vector<32xf32>
    %35 = vector.multi_reduction <add>, %34, %cst_26 [0] : vector<32x32xf32> to vector<32xf32>
    %36 = vector.shape_cast %35 : vector<32xf32> to vector<1x32xf32>
    %cst_27 = arith.constant 3.125000e-02 : f32
    %37 = vector.broadcast %cst_27 : f32 to vector<1x32xf32>
    %38 = arith.mulf %33, %37 : vector<1x32xf32>
    %cst_28 = arith.constant 3.125000e-02 : f32
    %39 = vector.broadcast %cst_28 : f32 to vector<1x32xf32>
    %40 = arith.mulf %36, %39 : vector<1x32xf32>
    %41 = arith.mulf %38, %38 : vector<1x32xf32>
    %42 = arith.subf %40, %41 : vector<1x32xf32>
    %43 = vector.broadcast %38 : vector<1x32xf32> to vector<32x32xf32>
    %44 = arith.subf %31, %43 : vector<32x32xf32>
    %cst_29 = arith.constant 8.000000e-01 : f32
    %45 = vector.broadcast %cst_29 : f32 to vector<1x32xf32>
    %46 = arith.addf %42, %45 : vector<1x32xf32>
    %47 = math.rsqrt %46 : vector<1x32xf32>
    %48 = vector.broadcast %47 : vector<1x32xf32> to vector<32x32xf32>
    %49 = arith.mulf %44, %48 : vector<32x32xf32>
    %c0_30 = arith.constant 0 : index
    %c0_31 = arith.constant 0 : index
    %50 = vector.load %arg3[%c0_30, %c0_31] : memref<1x32xf32, #tpu.memory_space<vmem>>, vector<1x32xf32>
    %51 = vector.broadcast %50 : vector<1x32xf32> to vector<32x32xf32>
    %52 = arith.mulf %49, %51 : vector<32x32xf32>
    %c0_32 = arith.constant 0 : index
    %c0_33 = arith.constant 0 : index
    %53 = vector.load %arg4[%c0_32, %c0_33] : memref<1x32xf32, #tpu.memory_space<vmem>>, vector<1x32xf32>
    %54 = vector.broadcast %53 : vector<1x32xf32> to vector<32x32xf32>
    %55 = arith.addf %52, %54 : vector<32x32xf32>
    %56 = vector.shape_cast %55 : vector<32x32xf32> to vector<2x4x4x32xf32>
    %c0_34 = arith.constant 0 : index
    %c0_35 = arith.constant 0 : index
    %c0_36 = arith.constant 0 : index
    %c0_37 = arith.constant 0 : index
    %57 = vector.load %arg5[%c0_34, %c0_35, %c0_36, %c0_37] : memref<2x4x4x32xf32, #tpu.memory_space<vmem>>, vector<2x4x4x32xf32>
    tpu.vector_store %arg5[%c0_34, %c0_35, %c0_36, %c0_37], %56 {strides = array<i32>} : memref<2x4x4x32xf32, #tpu.memory_space<vmem>>, vector<2x4x4x32xf32>,
    return
  }
}

module attributes {stable_mosaic.version = 11 : i64} {
  func.func @kernel(%arg0: memref<2x3x3x128xf32, #tpu.memory_space<vmem>>, %arg1: memref<2x2x128x64xf32, #tpu.memory_space<vmem>>, %arg2: memref<1x64xf32, #tpu.memory_space<vmem>>, %arg3: memref<1x64xf32, #tpu.memory_space<vmem>>, %arg4: memref<1x64xf32, #tpu.memory_space<vmem>>, %arg5: memref<2x2x2x64xf32, #tpu.memory_space<vmem>>) attributes {dimension_semantics = [], scalar_prefetch = 0 : i64, scratch_operands = 0 : i64, tpu.core_type = #tpu.core_type<tc>} {
    %c0 = arith.constant 0 : index
    %c0_0 = arith.constant 0 : index
    %c0_1 = arith.constant 0 : index
    %c0_2 = arith.constant 0 : index
    %0 = vector.load %arg0[%c0, %c0_0, %c0_1, %c0_2] : memref<2x3x3x128xf32, #tpu.memory_space<vmem>>, vector<2x3x3x128xf32>
    %cst = arith.constant 0.000000e+00 : f32
    %1 = vector.broadcast %cst : f32 to vector<8x64xf32>
    %2 = vector.extract_strided_slice %0 {offsets = [0, 0, 0, 0], sizes = [2, 2, 2, 128], strides = [1, 1, 1, 1]} : vector<2x3x3x128xf32> to vector<2x2x2x128xf32>
    %3 = vector.shape_cast %2 : vector<2x2x2x128xf32> to vector<8x128xf32>
    %c0_3 = arith.constant 0 : index
    %c0_4 = arith.constant 0 : index
    %c0_5 = arith.constant 0 : index
    %c0_6 = arith.constant 0 : index
    %4 = vector.load %arg1[%c0_3, %c0_4, %c0_5, %c0_6] : memref<2x2x128x64xf32, #tpu.memory_space<vmem>>, vector<1x1x128x64xf32>
    %5 = vector.shape_cast %4 : vector<1x1x128x64xf32> to vector<128x64xf32>
    %cst_7 = arith.constant dense<0.000000e+00> : vector<8x64xf32>
    %6 = tpu.matmul %3, %5, %cst_7 {dimension_numbers = #tpu.dot_dimension_numbers<[1], [0], [0], [1], [0, 0, 1, 1], [], []>} : vector<8x128xf32>, vector<128x64xf32>, vector<8x64xf32> -> vector<8x64xf32>
    %7 = arith.addf %1, %6 : vector<8x64xf32>
    %8 = vector.extract_strided_slice %0 {offsets = [0, 0, 1, 0], sizes = [2, 2, 2, 128], strides = [1, 1, 1, 1]} : vector<2x3x3x128xf32> to vector<2x2x2x128xf32>
    %9 = vector.shape_cast %8 : vector<2x2x2x128xf32> to vector<8x128xf32>
    %c0_8 = arith.constant 0 : index
    %c1 = arith.constant 1 : index
    %c0_9 = arith.constant 0 : index
    %c0_10 = arith.constant 0 : index
    %10 = vector.load %arg1[%c0_8, %c1, %c0_9, %c0_10] : memref<2x2x128x64xf32, #tpu.memory_space<vmem>>, vector<1x1x128x64xf32>
    %11 = vector.shape_cast %10 : vector<1x1x128x64xf32> to vector<128x64xf32>
    %cst_11 = arith.constant dense<0.000000e+00> : vector<8x64xf32>
    %12 = tpu.matmul %9, %11, %cst_11 {dimension_numbers = #tpu.dot_dimension_numbers<[1], [0], [0], [1], [0, 0, 1, 1], [], []>} : vector<8x128xf32>, vector<128x64xf32>, vector<8x64xf32> -> vector<8x64xf32>
    %13 = arith.addf %7, %12 : vector<8x64xf32>
    %14 = vector.extract_strided_slice %0 {offsets = [0, 1, 0, 0], sizes = [2, 2, 2, 128], strides = [1, 1, 1, 1]} : vector<2x3x3x128xf32> to vector<2x2x2x128xf32>
    %15 = vector.shape_cast %14 : vector<2x2x2x128xf32> to vector<8x128xf32>
    %c1_12 = arith.constant 1 : index
    %c0_13 = arith.constant 0 : index
    %c0_14 = arith.constant 0 : index
    %c0_15 = arith.constant 0 : index
    %16 = vector.load %arg1[%c1_12, %c0_13, %c0_14, %c0_15] : memref<2x2x128x64xf32, #tpu.memory_space<vmem>>, vector<1x1x128x64xf32>
    %17 = vector.shape_cast %16 : vector<1x1x128x64xf32> to vector<128x64xf32>
    %cst_16 = arith.constant dense<0.000000e+00> : vector<8x64xf32>
    %18 = tpu.matmul %15, %17, %cst_16 {dimension_numbers = #tpu.dot_dimension_numbers<[1], [0], [0], [1], [0, 0, 1, 1], [], []>} : vector<8x128xf32>, vector<128x64xf32>, vector<8x64xf32> -> vector<8x64xf32>
    %19 = arith.addf %13, %18 : vector<8x64xf32>
    %20 = vector.extract_strided_slice %0 {offsets = [0, 1, 1, 0], sizes = [2, 2, 2, 128], strides = [1, 1, 1, 1]} : vector<2x3x3x128xf32> to vector<2x2x2x128xf32>
    %21 = vector.shape_cast %20 : vector<2x2x2x128xf32> to vector<8x128xf32>
    %c1_17 = arith.constant 1 : index
    %c1_18 = arith.constant 1 : index
    %c0_19 = arith.constant 0 : index
    %c0_20 = arith.constant 0 : index
    %22 = vector.load %arg1[%c1_17, %c1_18, %c0_19, %c0_20] : memref<2x2x128x64xf32, #tpu.memory_space<vmem>>, vector<1x1x128x64xf32>
    %23 = vector.shape_cast %22 : vector<1x1x128x64xf32> to vector<128x64xf32>
    %cst_21 = arith.constant dense<0.000000e+00> : vector<8x64xf32>
    %24 = tpu.matmul %21, %23, %cst_21 {dimension_numbers = #tpu.dot_dimension_numbers<[1], [0], [0], [1], [0, 0, 1, 1], [], []>} : vector<8x128xf32>, vector<128x64xf32>, vector<8x64xf32> -> vector<8x64xf32>
    %25 = arith.addf %19, %24 : vector<8x64xf32>
    %c0_22 = arith.constant 0 : index
    %c0_23 = arith.constant 0 : index
    %26 = vector.load %arg2[%c0_22, %c0_23] : memref<1x64xf32, #tpu.memory_space<vmem>>, vector<1x64xf32>
    %27 = vector.broadcast %26 : vector<1x64xf32> to vector<8x64xf32>
    %28 = arith.addf %25, %27 : vector<8x64xf32>
    %cst_24 = arith.constant 2.000000e-01 : f32
    %29 = vector.broadcast %cst_24 : f32 to vector<8x64xf32>
    %30 = arith.mulf %29, %28 : vector<8x64xf32>
    %31 = arith.maximumf %28, %30 : vector<8x64xf32>
    %cst_25 = arith.constant dense<0.000000e+00> : vector<64xf32>
    %32 = vector.multi_reduction <add>, %31, %cst_25 [0] : vector<8x64xf32> to vector<64xf32>
    %33 = vector.shape_cast %32 : vector<64xf32> to vector<1x64xf32>
    %34 = arith.mulf %31, %31 : vector<8x64xf32>
    %cst_26 = arith.constant dense<0.000000e+00> : vector<64xf32>
    %35 = vector.multi_reduction <add>, %34, %cst_26 [0] : vector<8x64xf32> to vector<64xf32>
    %36 = vector.shape_cast %35 : vector<64xf32> to vector<1x64xf32>
    %cst_27 = arith.constant 1.250000e-01 : f32
    %37 = vector.broadcast %cst_27 : f32 to vector<1x64xf32>
    %38 = arith.mulf %33, %37 : vector<1x64xf32>
    %cst_28 = arith.constant 1.250000e-01 : f32
    %39 = vector.broadcast %cst_28 : f32 to vector<1x64xf32>
    %40 = arith.mulf %36, %39 : vector<1x64xf32>
    %41 = arith.mulf %38, %38 : vector<1x64xf32>
    %42 = arith.subf %40, %41 : vector<1x64xf32>
    %43 = vector.broadcast %38 : vector<1x64xf32> to vector<8x64xf32>
    %44 = arith.subf %31, %43 : vector<8x64xf32>
    %cst_29 = arith.constant 8.000000e-01 : f32
    %45 = vector.broadcast %cst_29 : f32 to vector<1x64xf32>
    %46 = arith.addf %42, %45 : vector<1x64xf32>
    %47 = math.rsqrt %46 : vector<1x64xf32>
    %48 = vector.broadcast %47 : vector<1x64xf32> to vector<8x64xf32>
    %49 = arith.mulf %44, %48 : vector<8x64xf32>
    %c0_30 = arith.constant 0 : index
    %c0_31 = arith.constant 0 : index
    %50 = vector.load %arg3[%c0_30, %c0_31] : memref<1x64xf32, #tpu.memory_space<vmem>>, vector<1x64xf32>
    %51 = vector.broadcast %50 : vector<1x64xf32> to vector<8x64xf32>
    %52 = arith.mulf %49, %51 : vector<8x64xf32>
    %c0_32 = arith.constant 0 : index
    %c0_33 = arith.constant 0 : index
    %53 = vector.load %arg4[%c0_32, %c0_33] : memref<1x64xf32, #tpu.memory_space<vmem>>, vector<1x64xf32>
    %54 = vector.broadcast %53 : vector<1x64xf32> to vector<8x64xf32>
    %55 = arith.addf %52, %54 : vector<8x64xf32>
    %56 = vector.shape_cast %55 : vector<8x64xf32> to vector<2x2x2x64xf32>
    %c0_34 = arith.constant 0 : index
    %c0_35 = arith.constant 0 : index
    %c0_36 = arith.constant 0 : index
    %c0_37 = arith.constant 0 : index
    %57 = vector.load %arg5[%c0_34, %c0_35, %c0_36, %c0_37] : memref<2x2x2x64xf32, #tpu.memory_space<vmem>>, vector<2x2x2x64xf32>
    tpu.vector_store %arg5[%c0_34, %c0_35, %c0_36, %c0_37], %56 {strides = array<i32>} : memref<2x2x2x64xf32, #tpu.memory_space<vmem>>, vector<2x2x2x64xf32>,
    return
  }
}

module attributes {stable_mosaic.version = 11 : i64} {
  func.func @kernel(%arg0: memref<2x2x2x256xf32, #tpu.memory_space<vmem>>, %arg1: memref<2x2x256x128xf32, #tpu.memory_space<vmem>>, %arg2: memref<1x128xf32, #tpu.memory_space<vmem>>, %arg3: memref<1x128xf32, #tpu.memory_space<vmem>>, %arg4: memref<1x128xf32, #tpu.memory_space<vmem>>, %arg5: memref<128x1xf32, #tpu.memory_space<vmem>>, %arg6: memref<1x1xf32, #tpu.memory_space<vmem>>, %arg7: memref<2x1xf32, #tpu.memory_space<vmem>>) attributes {dimension_semantics = [], scalar_prefetch = 0 : i64, scratch_operands = 0 : i64, tpu.core_type = #tpu.core_type<tc>} {
    %c0 = arith.constant 0 : index
    %c0_0 = arith.constant 0 : index
    %c0_1 = arith.constant 0 : index
    %c0_2 = arith.constant 0 : index
    %0 = vector.load %arg0[%c0, %c0_0, %c0_1, %c0_2] : memref<2x2x2x256xf32, #tpu.memory_space<vmem>>, vector<2x2x2x256xf32>
    %cst = arith.constant 0.000000e+00 : f32
    %1 = vector.broadcast %cst : f32 to vector<2x128xf32>
    %2 = vector.extract_strided_slice %0 {offsets = [0, 0, 0, 0], sizes = [2, 1, 1, 256], strides = [1, 1, 1, 1]} : vector<2x2x2x256xf32> to vector<2x1x1x256xf32>
    %3 = vector.shape_cast %2 : vector<2x1x1x256xf32> to vector<2x256xf32>
    %c0_3 = arith.constant 0 : index
    %c0_4 = arith.constant 0 : index
    %c0_5 = arith.constant 0 : index
    %c0_6 = arith.constant 0 : index
    %4 = vector.load %arg1[%c0_3, %c0_4, %c0_5, %c0_6] : memref<2x2x256x128xf32, #tpu.memory_space<vmem>>, vector<1x1x256x128xf32>
    %5 = vector.shape_cast %4 : vector<1x1x256x128xf32> to vector<256x128xf32>
    %cst_7 = arith.constant dense<0.000000e+00> : vector<2x128xf32>
    %6 = tpu.matmul %3, %5, %cst_7 {dimension_numbers = #tpu.dot_dimension_numbers<[1], [0], [0], [1], [0, 0, 1, 1], [], []>} : vector<2x256xf32>, vector<256x128xf32>, vector<2x128xf32> -> vector<2x128xf32>
    %7 = arith.addf %1, %6 : vector<2x128xf32>
    %8 = vector.extract_strided_slice %0 {offsets = [0, 0, 1, 0], sizes = [2, 1, 1, 256], strides = [1, 1, 1, 1]} : vector<2x2x2x256xf32> to vector<2x1x1x256xf32>
    %9 = vector.shape_cast %8 : vector<2x1x1x256xf32> to vector<2x256xf32>
    %c0_8 = arith.constant 0 : index
    %c1 = arith.constant 1 : index
    %c0_9 = arith.constant 0 : index
    %c0_10 = arith.constant 0 : index
    %10 = vector.load %arg1[%c0_8, %c1, %c0_9, %c0_10] : memref<2x2x256x128xf32, #tpu.memory_space<vmem>>, vector<1x1x256x128xf32>
    %11 = vector.shape_cast %10 : vector<1x1x256x128xf32> to vector<256x128xf32>
    %cst_11 = arith.constant dense<0.000000e+00> : vector<2x128xf32>
    %12 = tpu.matmul %9, %11, %cst_11 {dimension_numbers = #tpu.dot_dimension_numbers<[1], [0], [0], [1], [0, 0, 1, 1], [], []>} : vector<2x256xf32>, vector<256x128xf32>, vector<2x128xf32> -> vector<2x128xf32>
    %13 = arith.addf %7, %12 : vector<2x128xf32>
    %14 = vector.extract_strided_slice %0 {offsets = [0, 1, 0, 0], sizes = [2, 1, 1, 256], strides = [1, 1, 1, 1]} : vector<2x2x2x256xf32> to vector<2x1x1x256xf32>
    %15 = vector.shape_cast %14 : vector<2x1x1x256xf32> to vector<2x256xf32>
    %c1_12 = arith.constant 1 : index
    %c0_13 = arith.constant 0 : index
    %c0_14 = arith.constant 0 : index
    %c0_15 = arith.constant 0 : index
    %16 = vector.load %arg1[%c1_12, %c0_13, %c0_14, %c0_15] : memref<2x2x256x128xf32, #tpu.memory_space<vmem>>, vector<1x1x256x128xf32>
    %17 = vector.shape_cast %16 : vector<1x1x256x128xf32> to vector<256x128xf32>
    %cst_16 = arith.constant dense<0.000000e+00> : vector<2x128xf32>
    %18 = tpu.matmul %15, %17, %cst_16 {dimension_numbers = #tpu.dot_dimension_numbers<[1], [0], [0], [1], [0, 0, 1, 1], [], []>} : vector<2x256xf32>, vector<256x128xf32>, vector<2x128xf32> -> vector<2x128xf32>
    %19 = arith.addf %13, %18 : vector<2x128xf32>
    %20 = vector.extract_strided_slice %0 {offsets = [0, 1, 1, 0], sizes = [2, 1, 1, 256], strides = [1, 1, 1, 1]} : vector<2x2x2x256xf32> to vector<2x1x1x256xf32>
    %21 = vector.shape_cast %20 : vector<2x1x1x256xf32> to vector<2x256xf32>
    %c1_17 = arith.constant 1 : index
    %c1_18 = arith.constant 1 : index
    %c0_19 = arith.constant 0 : index
    %c0_20 = arith.constant 0 : index
    %22 = vector.load %arg1[%c1_17, %c1_18, %c0_19, %c0_20] : memref<2x2x256x128xf32, #tpu.memory_space<vmem>>, vector<1x1x256x128xf32>
    %23 = vector.shape_cast %22 : vector<1x1x256x128xf32> to vector<256x128xf32>
    %cst_21 = arith.constant dense<0.000000e+00> : vector<2x128xf32>
    %24 = tpu.matmul %21, %23, %cst_21 {dimension_numbers = #tpu.dot_dimension_numbers<[1], [0], [0], [1], [0, 0, 1, 1], [], []>} : vector<2x256xf32>, vector<256x128xf32>, vector<2x128xf32> -> vector<2x128xf32>
    %25 = arith.addf %19, %24 : vector<2x128xf32>
    %c0_22 = arith.constant 0 : index
    %c0_23 = arith.constant 0 : index
    %26 = vector.load %arg2[%c0_22, %c0_23] : memref<1x128xf32, #tpu.memory_space<vmem>>, vector<1x128xf32>
    %27 = vector.broadcast %26 : vector<1x128xf32> to vector<2x128xf32>
    %28 = arith.addf %25, %27 : vector<2x128xf32>
    %cst_24 = arith.constant 2.000000e-01 : f32
    %29 = vector.broadcast %cst_24 : f32 to vector<2x128xf32>
    %30 = arith.mulf %29, %28 : vector<2x128xf32>
    %31 = arith.maximumf %28, %30 : vector<2x128xf32>
    %cst_25 = arith.constant dense<0.000000e+00> : vector<128xf32>
    %32 = vector.multi_reduction <add>, %31, %cst_25 [0] : vector<2x128xf32> to vector<128xf32>
    %33 = vector.shape_cast %32 : vector<128xf32> to vector<1x128xf32>
    %34 = arith.mulf %31, %31 : vector<2x128xf32>
    %cst_26 = arith.constant dense<0.000000e+00> : vector<128xf32>
    %35 = vector.multi_reduction <add>, %34, %cst_26 [0] : vector<2x128xf32> to vector<128xf32>
    %36 = vector.shape_cast %35 : vector<128xf32> to vector<1x128xf32>
    %cst_27 = arith.constant 5.000000e-01 : f32
    %37 = vector.broadcast %cst_27 : f32 to vector<1x128xf32>
    %38 = arith.mulf %33, %37 : vector<1x128xf32>
    %cst_28 = arith.constant 5.000000e-01 : f32
    %39 = vector.broadcast %cst_28 : f32 to vector<1x128xf32>
    %40 = arith.mulf %36, %39 : vector<1x128xf32>
    %41 = arith.mulf %38, %38 : vector<1x128xf32>
    %42 = arith.subf %40, %41 : vector<1x128xf32>
    %43 = vector.broadcast %38 : vector<1x128xf32> to vector<2x128xf32>
    %44 = arith.subf %31, %43 : vector<2x128xf32>
    %cst_29 = arith.constant 8.000000e-01 : f32
    %45 = vector.broadcast %cst_29 : f32 to vector<1x128xf32>
    %46 = arith.addf %42, %45 : vector<1x128xf32>
    %47 = math.rsqrt %46 : vector<1x128xf32>
    %48 = vector.broadcast %47 : vector<1x128xf32> to vector<2x128xf32>
    %49 = arith.mulf %44, %48 : vector<2x128xf32>
    %c0_30 = arith.constant 0 : index
    %c0_31 = arith.constant 0 : index
    %50 = vector.load %arg3[%c0_30, %c0_31] : memref<1x128xf32, #tpu.memory_space<vmem>>, vector<1x128xf32>
    %51 = vector.broadcast %50 : vector<1x128xf32> to vector<2x128xf32>
    %52 = arith.mulf %49, %51 : vector<2x128xf32>
    %c0_32 = arith.constant 0 : index
    %c0_33 = arith.constant 0 : index
    %53 = vector.load %arg4[%c0_32, %c0_33] : memref<1x128xf32, #tpu.memory_space<vmem>>, vector<1x128xf32>
    %54 = vector.broadcast %53 : vector<1x128xf32> to vector<2x128xf32>
    %55 = arith.addf %52, %54 : vector<2x128xf32>
    %c0_34 = arith.constant 0 : index
    %c0_35 = arith.constant 0 : index
    %56 = vector.load %arg5[%c0_34, %c0_35] : memref<128x1xf32, #tpu.memory_space<vmem>>, vector<128x1xf32>
    %cst_36 = arith.constant dense<0.000000e+00> : vector<2x1xf32>
    %57 = tpu.matmul %55, %56, %cst_36 {dimension_numbers = #tpu.dot_dimension_numbers<[1], [0], [0], [1], [0, 0, 1, 1], [], []>} : vector<2x128xf32>, vector<128x1xf32>, vector<2x1xf32> -> vector<2x1xf32>
    %c0_37 = arith.constant 0 : index
    %c0_38 = arith.constant 0 : index
    %58 = vector.load %arg6[%c0_37, %c0_38] : memref<1x1xf32, #tpu.memory_space<vmem>>, vector<1x1xf32>
    %59 = vector.broadcast %58 : vector<1x1xf32> to vector<2x1xf32>
    %60 = arith.addf %57, %59 : vector<2x1xf32>
    %cst_39 = arith.constant 0.000000e+00 : f32
    %61 = vector.broadcast %cst_39 : f32 to vector<2x1xf32>
    %62 = arith.subf %61, %60 : vector<2x1xf32>
    %63 = math.exp %62 : vector<2x1xf32>
    %cst_40 = arith.constant 1.000000e+00 : f32
    %64 = vector.broadcast %cst_40 : f32 to vector<2x1xf32>
    %65 = arith.addf %64, %63 : vector<2x1xf32>
    %cst_41 = arith.constant 1.000000e+00 : f32
    %66 = vector.broadcast %cst_41 : f32 to vector<2x1xf32>
    %67 = arith.divf %66, %65 : vector<2x1xf32>
    %c0_42 = arith.constant 0 : index
    %c0_43 = arith.constant 0 : index
    %68 = vector.load %arg7[%c0_42, %c0_43] : memref<2x1xf32, #tpu.memory_space<vmem>>, vector<2x1xf32>
    tpu.vector_store %arg7[%c0_42, %c0_43], %67 {strides = array<i32>} : memref<2x1xf32, #tpu.memory_space<vmem>>, vector<2x1xf32>,
    return
  }
}

</mosaic_0001>

<bundles_post_ra>
// kernel: discriminator_forward.5
= control target key start
LH: loop header
LB: loop body
LE: loop exit
PB: predicated region body
PF: predicated region fallthrough
CT: control target
= control target key end

     0   :  { %8 = vsyncpa [#allocation3], 0  ;;  %s136_s15 = smov [#allocation2]   ;;  %s137_s17 = smov 256   ;;  %s174_s0 = inlined_call_operand.vmem [shape: f32[2,10], index: 0, kind: input, shape index: {}]   ;;  %s175_s1 = inlined_call_operand.hbm [shape: f32[10,256], index: 1, kind: input, shape index: {}]   ;;  %s176_s2 = inlined_call_operand.vmem [shape: f32[1,256], index: 2, kind: input, shape index: {}]   ;;  %s177_s3 = inlined_call_operand.vmem [shape: f32[2,256], index: 3, kind: output, shape index: {}]  }
   0x1   :  { %s15_s14 = sshll.u32 %s175_s1, 4  ;;  %s17_s16 = sshll.u32 %s136_s15, 4  ;;  %s16_s14 = int_to_ptr.hbm [resolvable:$true] %s15_s14  ;;  %s18_s16 = int_to_ptr.vmem [resolvable:$true] %s17_s16 }
   0x2   :  { %s138_s18 = smov 16  }
   0x3   :  { %23 = dma.hbm_to_vmem [thread:$0]  %s16_s14, 512, %s18_s16, [#allocation3], %s137_s17, %s137_s17, %s138_s18  }
   0x4   :  { %134 = dma.done.wait [#allocation3], 512  }
   0x5   :  { %135 = vsyncadd [#allocation3], 4294966784  ;;  %vm45_vm0 = vcmask 1041408   ;;  %v34_v0 = vld [vmem:[#allocation2 + $0x18] sm:$0x3]  ;;  %v32_v2 = vld [vmem:[#allocation2 + $0x8] sm:$0xff] }
   0x6   :  { %v33_v1 = vld [vmem:[#allocation2 + $0x10] sm:$0x3]  ;;  %105 = vmatpush.msk.msra.mxu1 %vm45_vm0, %v34_v0  ;;  %v30_v3 = vld [vmem:[%s174_s0] sm:$0x3]  ;;  %vm41_vm1 = vcmask 80896  }
   0x7   :  { %103 = vmatpush.msk.msra.mxu0 %vm45_vm0, %v33_v1  ;;  %v31_v4 = vld [vmem:[#allocation2] sm:$0xff] }
   0x8   :  { %87 = vmatpush.msra.mxu1 %v32_v2  ;;  %v35_v5 = vld [vmem:[%s176_s2] sm:$0x3] }
   0x9   :  { %67 = vmatpush.msra.mxu0 %v31_v4  ;;  %106 = vmatmul.msk.f32.vlgmr.msra.gmra.mxu1 %vm41_vm1, %v30_v3  ;;  %v38_v6 = vperm.slane %v35_v5, 1  ;;  %v37_v7 = vperm.slane %v35_v5, 0 }
   0xa   :  { %104 = vmatmul.msk.f32.vlgmr.msra.gmra.mxu0 %vm41_vm1, %v30_v3 }
  0x86   :  { %v89_v8 = vpop.f32.mrf.mxu1 }
  0x87   :  { %v69_v9 = vpop.f32.mrf.mxu0  ;;  %v90_v10 = vadd.f32 %v89_v8, %v38_v6 }
  0x88   :  { %v70_v11 = vadd.f32 %v69_v9, %v37_v7 }
  0x89   :  { %v94_v12 = vrot.slane %v90_v10, 6 }
  0x8b   :  { %v95_v13 = vsel %vm45_vm0, %v70_v11, %v94_v12 }
  0x8c   :  { %97 = vst [vmem:[%s177_s3] sm:$0xf] %v95_v13 }
  0x8d   :  { %102 = vsyncpa [#allocation3], 1 }

// kernel: discriminator_forward.6
= control target key start
LH: loop header
LB: loop body
LE: loop exit
PB: predicated region body
PF: predicated region fallthrough
CT: control target
= control target key end

     0   :  { %s641_s12 = smov 0   ;;  %s778_s0 = inlined_call_operand.vmem [shape: f32[2,9,9,16], index: 0, kind: input, shape index: {}]   ;;  %s779_s1 = inlined_call_operand.vmem [shape: f32[2,2,16,16], index: 1, kind: input, shape index: {}]   ;;  %s780_s2 = inlined_call_operand.vmem [shape: f32[1,16], index: 2, kind: input, shape index: {}]   ;;  %s781_s3 = inlined_call_operand.vmem [shape: f32[2,8,8,16], index: 3, kind: output, shape index: {}]  }
   0x1 LB: > { %s554_s13 = sadd.s32 4294967295, %s619_s12   ;;  %p558_p0 = scmp.ge.s32.totalorder %s619_s12, 1  ;;  %s619_s12 = sphi %s641_s12, %s13_s12  }
   0x2   : > { %p137_p1 = scmp.lt.s32.totalorder %s619_s12, 3 }
   0x4   : > { %p138_p2 = pnand %p558_p0, %p137_p1 }
   0x5   : > { %p161_p3 = scmp.lt.s32.totalorder (!%p138_p2), %s554_s13, 1 }
   0x6   : > { %141 = sbr.rel (%p138_p2) target bundleno = 216 (0xd8), region = 32 }
   0xb   : > { %v581_v0 = vld [vmem:[%s779_s1 + $0x28] sm:$0xff]  ;;  %v580_v1 = vld [vmem:[%s779_s1 + $0x20] sm:$0xff]  ;;  %v591_v2 = vld [vmem:[%s779_s1 + $0x38] sm:$0xff]  ;;  %s783_s13 = smov (!%p161_p3, %s554_s13), 1  ;;  %vm235_vm0 = vcmask 130048   ;;  %vm207_vm1 = vcmask 1046528  }
   0xc   : > { %370 = vmatpush.msra.mxu2 %v581_v0  ;;  %428 = vmatpush.msra.mxu3 %v591_v2  ;;  %v563_v3 = vld [vmem:[%s779_s1 + $0x18] sm:$0xff]  ;;  %v190_v4 = vld [vmem:[%s779_s1 + $0x8] sm:$0xff]  ;;  %v590_v5 = vld [vmem:[%s779_s1 + $0x30] sm:$0xff]  ;;  %s603_s30 = smul.u32 144, %s783_s13  ;;  %s602_s9 = sshll.u32 %s783_s13, 6 }
   0xd   : > { %266 = vmatpush.msra.mxu0 %v563_v3  ;;  %323 = vmatpush.msra.mxu1 %v190_v4  ;;  %v562_v6 = vld [vmem:[%s779_s1 + $0x10] sm:$0xff]  ;;  %v189_v7 = vld [vmem:[%s779_s1] sm:$0xff]  ;;  %s750_s14 = scalar_lea.vmem %s781_s3, %s602_s9 }
   0xe   : > { %371 = vmatpush.msra.mxu2 %v580_v1  ;;  %429 = vmatpush.msra.mxu3 %v590_v5  ;;  %s679_s6 = scalar_lea.vmem %s778_s0, %s603_s30  ;;  %v743_v58 = vld [vmem:[%s780_s2] ss:$0 sm:$0xff] }
   0xf   : > { %267 = vmatpush.msra.mxu0 %v562_v6  ;;  %324 = vmatpush.msra.mxu1 %v189_v7  ;;  %v173_v8 = vld [vmem:[%s679_s6 + $0x10] sm:$0xff]  ;;  %v174_v9 = vld [vmem:[%s679_s6 + $0x18] sm:$0x1]  ;;  %v171_v10 = vld [vmem:[%s679_s6] sm:$0xff] }
  0x10   : > { %v211_v11 = vrot.slane %v173_v8, 1  ;;  %582 = vmatmul.msk.f32.vlgmr.msra.gmra.mxu2 %vm235_vm0, %v173_v8  ;;  %v212_v12 = vrot.slane %v174_v9, 1  ;;  %v172_v13 = vld [vmem:[%s679_s6 + $0x8] sm:$0x1]  ;;  %v208_v14 = vrot.slane %v171_v10, 1  ;;  %572 = vmatmul.msk.f32.vlgmr.msra.gmra.mxu1 %vm235_vm0, %v171_v10  ;;  %v175_v16 = vld [vmem:[%s679_s6 + $0x20] sm:$0xff] }
  0x11   : > { %v209_v15 = vrot.slane %v172_v13, 1  ;;  %v176_v17 = vld [vmem:[%s679_s6 + $0x28] sm:$0x1]  ;;  %v214_v20 = vrot.slane %v175_v16, 1  ;;  %v177_v23 = vld [vmem:[%s679_s6 + $0x30] sm:$0xff]  ;;  %v179_v28 = vld [vmem:[%s679_s6 + $0x40] sm:$0xff] }
  0x12   : > { %v213_v18 = vsel %vm207_vm1, %v211_v11, %v212_v12  ;;  %v215_v21 = vrot.slane %v176_v17, 1  ;;  %v178_v24 = vld [vmem:[%s679_s6 + $0x38] sm:$0x1]  ;;  %v217_v25 = vrot.slane %v177_v23, 1  ;;  %v180_v29 = vld [vmem:[%s679_s6 + $0x48] sm:$0x1] }
  0x13   : > { %592 = vmatmul.msk.f32.vlgmr.msra.gmra.mxu3 %vm235_vm0, %v213_v18  ;;  %v210_v19 = vsel %vm207_vm1, %v208_v14, %v209_v15  ;;  %v218_v26 = vrot.slane %v178_v24, 1  ;;  %v220_v30 = vrot.slane %v179_v28, 1  ;;  %v221_v31 = vrot.slane %v180_v29, 1  ;;  %v181_v33 = vld [vmem:[%s679_s6 + $0x50] sm:$0xff]  ;;  %v182_v34 = vld [vmem:[%s679_s6 + $0x58] sm:$0x1] }
  0x14   : > { %564 = vmatmul.msk.f32.vlgmr.msra.gmra.mxu0 %vm235_vm0, %v210_v19  ;;  %v216_v22 = vsel %vm207_vm1, %v214_v20, %v215_v21  ;;  %v223_v35 = vrot.slane %v181_v33, 1  ;;  %v224_v36 = vrot.slane %v182_v34, 1  ;;  %v183_v38 = vld [vmem:[%s679_s6 + $0x60] sm:$0xff]  ;;  %v184_v39 = vld [vmem:[%s679_s6 + $0x68] sm:$0x1]  ;;  %v185_v43 = vld [vmem:[%s679_s6 + $0x70] sm:$0xff] }
  0x15   : > { %v219_v27 = vsel %vm207_vm1, %v217_v25, %v218_v26  ;;  %v222_v32 = vsel %vm207_vm1, %v220_v30, %v221_v31  ;;  %v226_v40 = vrot.slane %v183_v38, 1  ;;  %v227_v41 = vrot.slane %v184_v39, 1  ;;  %v186_v44 = vld [vmem:[%s679_s6 + $0x78] sm:$0x1]  ;;  %v187_v48 = vld [vmem:[%s679_s6 + $0x80] sm:$0xff] }
  0x16   : > { %v225_v37 = vsel %vm207_vm1, %v223_v35, %v224_v36  ;;  %v229_v45 = vrot.slane %v185_v43, 1  ;;  %v230_v46 = vrot.slane %v186_v44, 1  ;;  %v188_v49 = vld [vmem:[%s679_s6 + $0x88] sm:$0x1]  ;;  %v406_v50 = vrot.slane %v187_v48, 1 }
  0x17   : > { %v228_v42 = vsel %vm207_vm1, %v226_v40, %v227_v41  ;;  %v407_v51 = vrot.slane %v188_v49, 1 }
  0x18   : > { %583 = vmatmul.msk.f32.gmra.mxu2 %vm235_vm0, %v175_v16  ;;  %573 = vmatmul.msk.f32.gmra.mxu1 %vm235_vm0, %v173_v8  ;;  %v231_v47 = vsel %vm207_vm1, %v229_v45, %v230_v46 }
  0x19   : > { %v408_v52 = vsel %vm207_vm1, %v406_v50, %v407_v51 }
  0x1b   : > { %593 = vmatmul.msk.f32.gmra.mxu3 %vm235_vm0, %v216_v22 }
  0x1c   : > { %565 = vmatmul.msk.f32.gmra.mxu0 %vm235_vm0, %v213_v18 }
  0x20   : > { %584 = vmatmul.msk.f32.gmra.mxu2 %vm235_vm0, %v177_v23  ;;  %574 = vmatmul.msk.f32.gmra.mxu1 %vm235_vm0, %v175_v16 }
  0x23   : > { %594 = vmatmul.msk.f32.gmra.mxu3 %vm235_vm0, %v219_v27 }
  0x24   : > { %566 = vmatmul.msk.f32.gmra.mxu0 %vm235_vm0, %v216_v22 }
  0x28   : > { %585 = vmatmul.msk.f32.gmra.mxu2 %vm235_vm0, %v179_v28  ;;  %575 = vmatmul.msk.f32.gmra.mxu1 %vm235_vm0, %v177_v23 }
  0x2b   : > { %595 = vmatmul.msk.f32.gmra.mxu3 %vm235_vm0, %v222_v32 }
  0x2c   : > { %567 = vmatmul.msk.f32.gmra.mxu0 %vm235_vm0, %v219_v27 }
  0x30   : > { %586 = vmatmul.msk.f32.gmra.mxu2 %vm235_vm0, %v181_v33  ;;  %576 = vmatmul.msk.f32.gmra.mxu1 %vm235_vm0, %v179_v28 }
  0x33   : > { %596 = vmatmul.msk.f32.gmra.mxu3 %vm235_vm0, %v225_v37 }
  0x34   : > { %568 = vmatmul.msk.f32.gmra.mxu0 %vm235_vm0, %v222_v32 }
  0x38   : > { %587 = vmatmul.msk.f32.gmra.mxu2 %vm235_vm0, %v183_v38  ;;  %577 = vmatmul.msk.f32.gmra.mxu1 %vm235_vm0, %v181_v33 }
  0x3b   : > { %597 = vmatmul.msk.f32.gmra.mxu3 %vm235_vm0, %v228_v42 }
  0x3c   : > { %569 = vmatmul.msk.f32.gmra.mxu0 %vm235_vm0, %v225_v37 }
  0x40   : > { %588 = vmatmul.msk.f32.gmra.mxu2 %vm235_vm0, %v185_v43  ;;  %578 = vmatmul.msk.f32.gmra.mxu1 %vm235_vm0, %v183_v38 }
  0x43   : > { %598 = vmatmul.msk.f32.gmra.mxu3 %vm235_vm0, %v231_v47 }
  0x44   : > { %570 = vmatmul.msk.f32.gmra.mxu0 %vm235_vm0, %v228_v42 }
  0x48   : > { %589 = vmatmul.msk.f32.gmra.mxu2 %vm235_vm0, %v187_v48  ;;  %579 = vmatmul.msk.f32.gmra.mxu1 %vm235_vm0, %v185_v43 }
  0x4b   : > { %599 = vmatmul.msk.f32.gmra.mxu3 %vm235_vm0, %v408_v52 }
  0x4c   : > { %571 = vmatmul.msk.f32.gmra.mxu0 %vm235_vm0, %v231_v47 }
  0x8d   : > { %v326_v53 = vpop.f32.mrf.mxu1 }
  0x91   : > { %v269_v54 = vpop.f32.mrf.mxu0 }
  0x92   : > { %v327_v55 = vadd.f32 %v326_v53, %v269_v54 }
  0x93   : > { %v373_v56 = vpop.f32.mrf.mxu2 }
  0x94   : > { %v397_v57 = vadd.f32 %v373_v56, %v327_v55 }
  0x95   : > { %v329_v59 = vpop.f32.mrf.mxu1 }
  0x96   : > { %v431_v60 = vpop.f32.mrf.mxu3 }
  0x97   : > { %v455_v61 = vadd.f32 %v431_v60, %v397_v57 }
  0x99   : > { %v467_v62 = vadd.f32 %v743_v58, %v455_v61  ;;  %v272_v63 = vpop.f32.mrf.mxu0 }
  0x9a   : > { %v330_v0 = vadd.f32 %v329_v59, %v272_v63 }
  0x9b   : > { %v475_v1 = vmul.f32 0.2, %v467_v62  ;;  %v376_v2 = vpop.f32.mrf.mxu2 }
  0x9c   : > { %v398_v3 = vadd.f32 %v376_v2, %v330_v0 }
  0x9d   : > { %v483_v4 = vmax.f32 %v467_v62, %v475_v1  ;;  %v332_v5 = vpop.f32.mrf.mxu1 }
  0x9e   : > { %v434_v6 = vpop.f32.mrf.mxu3 }
  0x9f   : > { %491 = vst.msk [vmem:[%s750_s14] sm:$0xff] %vm235_vm0, %v483_v4  ;;  %v456_v7 = vadd.f32 %v434_v6, %v398_v3 }
  0xa1   : > { %v468_v8 = vadd.f32 %v743_v58, %v456_v7  ;;  %v275_v9 = vpop.f32.mrf.mxu0 }
  0xa2   : > { %v333_v10 = vadd.f32 %v332_v5, %v275_v9 }
  0xa3   : > { %v476_v11 = vmul.f32 0.2, %v468_v8  ;;  %v379_v12 = vpop.f32.mrf.mxu2 }
  0xa4   : > { %v399_v13 = vadd.f32 %v379_v12, %v333_v10 }
  0xa5   : > { %v484_v14 = vmax.f32 %v468_v8, %v476_v11  ;;  %v335_v15 = vpop.f32.mrf.mxu1 }
  0xa6   : > { %v437_v16 = vpop.f32.mrf.mxu3 }
  0xa7   : > { %492 = vst.msk [vmem:[%s750_s14 + $0x8] sm:$0xff] %vm235_vm0, %v484_v14  ;;  %v457_v17 = vadd.f32 %v437_v16, %v399_v13 }
  0xa9   : > { %v469_v18 = vadd.f32 %v743_v58, %v457_v17  ;;  %v278_v19 = vpop.f32.mrf.mxu0 }
  0xaa   : > { %v336_v20 = vadd.f32 %v335_v15, %v278_v19 }
  0xab   : > { %v477_v21 = vmul.f32 0.2, %v469_v18  ;;  %v382_v22 = vpop.f32.mrf.mxu2 }
  0xac   : > { %v400_v23 = vadd.f32 %v382_v22, %v336_v20 }
  0xad   : > { %v485_v24 = vmax.f32 %v469_v18, %v477_v21  ;;  %v338_v25 = vpop.f32.mrf.mxu1 }
  0xae   : > { %v440_v26 = vpop.f32.mrf.mxu3 }
  0xaf   : > { %493 = vst.msk [vmem:[%s750_s14 + $0x10] sm:$0xff] %vm235_vm0, %v485_v24  ;;  %v458_v27 = vadd.f32 %v440_v26, %v400_v23 }
  0xb1   : > { %v470_v28 = vadd.f32 %v743_v58, %v458_v27  ;;  %v281_v29 = vpop.f32.mrf.mxu0 }
  0xb2   : > { %v339_v30 = vadd.f32 %v338_v25, %v281_v29 }
  0xb3   : > { %v478_v31 = vmul.f32 0.2, %v470_v28  ;;  %v385_v32 = vpop.f32.mrf.mxu2 }
  0xb4   : > { %v401_v33 = vadd.f32 %v385_v32, %v339_v30 }
  0xb5   : > { %v486_v34 = vmax.f32 %v470_v28, %v478_v31  ;;  %v341_v35 = vpop.f32.mrf.mxu1 }
  0xb6   : > { %v443_v36 = vpop.f32.mrf.mxu3 }
  0xb7   : > { %494 = vst.msk [vmem:[%s750_s14 + $0x18] sm:$0xff] %vm235_vm0, %v486_v34  ;;  %v459_v37 = vadd.f32 %v443_v36, %v401_v33 }
  0xb9   : > { %v471_v38 = vadd.f32 %v743_v58, %v459_v37  ;;  %v284_v39 = vpop.f32.mrf.mxu0 }
  0xba   : > { %v342_v40 = vadd.f32 %v341_v35, %v284_v39 }
  0xbb   : > { %v479_v41 = vmul.f32 0.2, %v471_v38  ;;  %v388_v42 = vpop.f32.mrf.mxu2 }
  0xbc   : > { %v402_v43 = vadd.f32 %v388_v42, %v342_v40 }
  0xbd   : > { %v487_v44 = vmax.f32 %v471_v38, %v479_v41  ;;  %v344_v45 = vpop.f32.mrf.mxu1 }
  0xbe   : > { %v446_v46 = vpop.f32.mrf.mxu3 }
  0xbf   : > { %495 = vst.msk [vmem:[%s750_s14 + $0x20] sm:$0xff] %vm235_vm0, %v487_v44  ;;  %v460_v47 = vadd.f32 %v446_v46, %v402_v43 }
  0xc1   : > { %v472_v48 = vadd.f32 %v743_v58, %v460_v47  ;;  %v287_v49 = vpop.f32.mrf.mxu0 }
  0xc2   : > { %v345_v50 = vadd.f32 %v344_v45, %v287_v49 }
  0xc3   : > { %v480_v51 = vmul.f32 0.2, %v472_v48  ;;  %v391_v52 = vpop.f32.mrf.mxu2 }
  0xc4   : > { %v403_v53 = vadd.f32 %v391_v52, %v345_v50 }
  0xc5   : > { %v488_v54 = vmax.f32 %v472_v48, %v480_v51  ;;  %v347_v57 = vpop.f32.mrf.mxu1 }
  0xc6   : > { %v449_v55 = vpop.f32.mrf.mxu3 }
  0xc7   : > { %496 = vst.msk [vmem:[%s750_s14 + $0x28] sm:$0xff] %vm235_vm0, %v488_v54  ;;  %v461_v56 = vadd.f32 %v449_v55, %v403_v53 }
  0xc9   : > { %v473_v59 = vadd.f32 %v743_v58, %v461_v56  ;;  %v290_v60 = vpop.f32.mrf.mxu0 }
  0xca   : > { %v348_v61 = vadd.f32 %v347_v57, %v290_v60 }
  0xcb   : > { %v481_v62 = vmul.f32 0.2, %v473_v59  ;;  %v394_v63 = vpop.f32.mrf.mxu2 }
  0xcc   : > { %v404_v0 = vadd.f32 %v394_v63, %v348_v61 }
  0xcd   : > { %v489_v1 = vmax.f32 %v473_v59, %v481_v62 }
  0xce   : > { %v452_v2 = vpop.f32.mrf.mxu3 }
  0xcf   : > { %497 = vst.msk [vmem:[%s750_s14 + $0x30] sm:$0xff] %vm235_vm0, %v489_v1  ;;  %v462_v3 = vadd.f32 %v452_v2, %v404_v0 }
  0xd1   : > { %v474_v4 = vadd.f32 %v743_v58, %v462_v3 }
  0xd3   : > { %v482_v5 = vmul.f32 0.2, %v474_v4 }
  0xd5   : > { %v490_v6 = vmax.f32 %v474_v4, %v482_v5 }
  0xd7   : > { %498 = vst.msk [vmem:[%s750_s14 + $0x38] sm:$0xff] %vm235_vm0, %v490_v6 }
  0xd8 PF: > { %s13_s12 = sadd.s32 1, %s619_s12  }
  0xd9   : > { %p10_p4 = scmp.ge.s32.totalorder %s13_s12, 4  }
  0xdb   :  { %12 = sbr.rel (!%p10_p4) target bundleno = 1 (0x1), region = 65 }

// kernel: discriminator_forward.7
= control target key start
LH: loop header
LB: loop body
LE: loop exit
PB: predicated region body
PF: predicated region fallthrough
CT: control target
= control target key end

     0   :  { %vm117_vm0 = vcmask 523264   ;;  %vm377_vm1 = vcmask 261120   ;;  %vm459_vm5 = vcmask 257024   ;;  %s792_s1 = inlined_call_operand.vmem [shape: f32[2,2,64,32], index: 1, kind: input, shape index: {}]   ;;  %s793_s0 = inlined_call_operand.vmem [shape: f32[2,5,5,64], index: 0, kind: input, shape index: {}]   ;;  %s794_s2 = inlined_call_operand.vmem [shape: f32[1,32], index: 2, kind: input, shape index: {}]   ;;  %s795_s3 = inlined_call_operand.vmem [shape: f32[1,32], index: 3, kind: input, shape index: {}]   ;;  %s796_s4 = inlined_call_operand.vmem [shape: f32[1,32], index: 4, kind: input, shape index: {}]   ;;  %s797_s5 = inlined_call_operand.vmem [shape: f32[2,4,4,32], index: 5, kind: output, shape index: {}]  }
   0x1   :  { %v511_v0 = vld [vmem:[%s792_s1 + $0xb8] sm:$0xff]  ;;  %v510_v1 = vld [vmem:[%s792_s1 + $0xb0] sm:$0xff]  ;;  %v509_v5 = vld [vmem:[%s792_s1 + $0xa8] sm:$0xff] }
   0x2   :  { %v527_v2 = vld [vmem:[%s792_s1 + $0xf8] sm:$0xff]  ;;  %257 = vmatpush.msra.mxu2 %v511_v0  ;;  %v526_v6 = vld [vmem:[%s792_s1 + $0xf0] sm:$0xff]  ;;  %v525_v9 = vld [vmem:[%s792_s1 + $0xe8] sm:$0xff] }
   0x3   :  { %336 = vmatpush.msra.mxu3 %v527_v2  ;;  %v495_v3 = vld [vmem:[%s792_s1 + $0x78] sm:$0xff]  ;;  %v494_v7 = vld [vmem:[%s792_s1 + $0x70] sm:$0xff]  ;;  %v493_v10 = vld [vmem:[%s792_s1 + $0x68] sm:$0xff] }
   0x4   :  { %v37_v4 = vld [vmem:[%s792_s1 + $0x38] sm:$0xff]  ;;  %134 = vmatpush.msra.mxu0 %v495_v3  ;;  %v36_v8 = vld [vmem:[%s792_s1 + $0x30] sm:$0xff]  ;;  %258 = vmatpush.msra.mxu2 %v510_v1  ;;  %v508_v11 = vld [vmem:[%s792_s1 + $0xa0] sm:$0xff] }
   0x5   :  { %190 = vmatpush.msra.mxu1 %v37_v4  ;;  %337 = vmatpush.msra.mxu3 %v526_v6  ;;  %v35_v12 = vld [vmem:[%s792_s1 + $0x28] sm:$0xff]  ;;  %v524_v13 = vld [vmem:[%s792_s1 + $0xe0] sm:$0xff]  ;;  %v507_v16 = vld [vmem:[%s792_s1 + $0x98] sm:$0xff] }
   0x6   :  { %135 = vmatpush.msra.mxu0 %v494_v7  ;;  %259 = vmatpush.msra.mxu2 %v509_v5  ;;  %v492_v14 = vld [vmem:[%s792_s1 + $0x60] sm:$0xff]  ;;  %v523_v17 = vld [vmem:[%s792_s1 + $0xd8] sm:$0xff]  ;;  %v506_v18 = vld [vmem:[%s792_s1 + $0x90] sm:$0xff] }
   0x7   :  { %191 = vmatpush.msra.mxu1 %v36_v8  ;;  %338 = vmatpush.msra.mxu3 %v525_v9  ;;  %v34_v15 = vld [vmem:[%s792_s1 + $0x20] sm:$0xff]  ;;  %v491_v19 = vld [vmem:[%s792_s1 + $0x58] sm:$0xff]  ;;  %v505_v21 = vld [vmem:[%s792_s1 + $0x88] sm:$0xff] }
   0x8   :  { %136 = vmatpush.msra.mxu0 %v493_v10  ;;  %260 = vmatpush.msra.mxu2 %v508_v11  ;;  %v33_v20 = vld [vmem:[%s792_s1 + $0x18] sm:$0xff]  ;;  %v522_v22 = vld [vmem:[%s792_s1 + $0xd0] sm:$0xff]  ;;  %v20_v25 = vld [vmem:[%s793_s0] sm:$0x1f] }
   0x9   :  { %192 = vmatpush.msra.mxu1 %v35_v12  ;;  %339 = vmatpush.msra.mxu3 %v524_v13  ;;  %v490_v23 = vld [vmem:[%s792_s1 + $0x50] sm:$0xff]  ;;  %v648_v26 = vld [vmem:[%s793_s0 + $0x8] sm:$0x1f]  ;;  %v504_v28 = vld [vmem:[%s792_s1 + $0x80] sm:$0xff]  ;;  %v472_v30 = vrot.slane %v20_v25, 9 }
   0xa   :  { %137 = vmatpush.msra.mxu0 %v492_v14  ;;  %v32_v24 = vld [vmem:[%s792_s1 + $0x10] sm:$0xff]  ;;  %261 = vmatpush.msra.mxu2 %v507_v16  ;;  %v521_v29 = vld [vmem:[%s792_s1 + $0xc8] sm:$0xff]  ;;  %v474_v31 = vrot.slane %v648_v26, 9  ;;  %v520_v35 = vld [vmem:[%s792_s1 + $0xc0] sm:$0xff] }
   0xb   :  { %193 = vmatpush.msra.mxu1 %v34_v15  ;;  %340 = vmatpush.msra.mxu3 %v523_v17  ;;  %v653_v27 = vld [vmem:[%s793_s0 + $0x10] sm:$0x1f]  ;;  %v489_v33 = vld [vmem:[%s792_s1 + $0x48] sm:$0xff]  ;;  %v675_v36 = vld [vmem:[%s793_s0 + $0x18] sm:$0x1f] }
   0xc   :  { %138 = vmatpush.msra.mxu0 %v491_v19  ;;  %v476_v32 = vrot.slane %v653_v27, 9  ;;  %v31_v34 = vld [vmem:[%s792_s1 + $0x8] sm:$0xff]  ;;  %262 = vmatpush.msra.mxu2 %v506_v18  ;;  %98 = vst [vmem:[#allocation1] ss:$2 sm:$0xff] %v472_v30  ;;  %v478_v38 = vrot.slane %v675_v36, 9  ;;  %v488_v46 = vld [vmem:[%s792_s1 + $0x40] sm:$0xff] }
   0xd   :  { %194 = vmatpush.msra.mxu1 %v33_v20  ;;  %341 = vmatpush.msra.mxu3 %v522_v22  ;;  %v25_v37 = vld [vmem:[%s793_s0 + $0x28] sm:$0x1f]  ;;  %v684_v39 = vld [vmem:[%s793_s0 + $0x30] sm:$0x1f]  ;;  %100 = vst [vmem:[#allocation1 + $0x1] ss:$2 sm:$0xff] %v474_v31 }
   0xe   :  { %139 = vmatpush.msra.mxu0 %v490_v23  ;;  %v480_v40 = vrot.slane %v25_v37, 9  ;;  %263 = vmatpush.msra.mxu2 %v505_v21  ;;  %v27_v41 = vld [vmem:[%s793_s0 + $0x38] sm:$0x1f]  ;;  %v482_v42 = vrot.slane %v684_v39, 9  ;;  %102 = vst [vmem:[#allocation1 + $0x10] ss:$2 sm:$0xff] %v476_v32 }
   0xf   :  { %195 = vmatpush.msra.mxu1 %v32_v24  ;;  %342 = vmatpush.msra.mxu3 %v521_v29  ;;  %v484_v43 = vrot.slane %v27_v41, 9  ;;  %v28_v44 = vld [vmem:[%s793_s0 + $0x40] sm:$0x1f]  ;;  %104 = vst [vmem:[#allocation1 + $0x11] ss:$2 sm:$0xff] %v478_v38 }
  0x10   :  { %140 = vmatpush.msra.mxu0 %v489_v33  ;;  %264 = vmatpush.msra.mxu2 %v504_v28  ;;  %v486_v45 = vrot.slane %v28_v44, 9  ;;  %v30_v47 = vld [vmem:[%s792_s1] sm:$0xff]  ;;  %106 = vst [vmem:[#allocation1 + $0x20] ss:$2 sm:$0xff] %v480_v40  ;;  %v29_v56 = vld [vmem:[%s793_s0 + $0x48] sm:$0x1f] }
  0x11   :  { %196 = vmatpush.msra.mxu1 %v31_v34  ;;  %343 = vmatpush.msra.mxu3 %v520_v35  ;;  %108 = vst [vmem:[#allocation1 + $0x21] ss:$2 sm:$0xff] %v482_v42  ;;  %v24_v53 = vld [vmem:[%s793_s0 + $0x20] sm:$0x1f]  ;;  %v518_v62 = vrot.slane %v29_v56, 9 }
  0x12   :  { %141 = vmatpush.msra.mxu0 %v488_v46  ;;  %110 = vst [vmem:[#allocation1 + $0x30] ss:$2 sm:$0xff] %v484_v43  ;;  %v516_v59 = vrot.slane %v24_v53, 9  ;;  %v532_v22 = vld [vmem:[%s794_s2] ss:$0 sm:$0xff] }
  0x13   :  { %197 = vmatpush.msra.mxu1 %v30_v47  ;;  %112 = vst [vmem:[#allocation1 + $0x31] ss:$2 sm:$0xff] %v486_v45 }
  0x14   :  { %v113_v48 = vld.sshfl [vmem:[#allocation1] sm:$0xff pattern:$0x75316420] }
  0x15   :  { %155 = vst [vmem:[#allocation1] ss:$2 sm:$0xff] %v20_v25  ;;  %496 = vmatmul.msk.f32.vlgmr.msra.gmra.mxu0 %vm117_vm0, %v113_v48 }
  0x16   :  { %157 = vst [vmem:[#allocation1 + $0x1] ss:$2 sm:$0xff] %v648_v26  ;;  %v114_v49 = vld.sshfl [vmem:[#allocation1 + $0x10] sm:$0xff pattern:$0x75316420] }
  0x17   :  { %159 = vst [vmem:[#allocation1 + $0x10] ss:$2 sm:$0xff] %v653_v27 }
  0x18   :  { %161 = vst [vmem:[#allocation1 + $0x11] ss:$2 sm:$0xff] %v675_v36  ;;  %v115_v50 = vld.sshfl [vmem:[#allocation1 + $0x20] sm:$0xff pattern:$0x75316420] }
  0x19   :  { %163 = vst [vmem:[#allocation1 + $0x20] ss:$2 sm:$0xff] %v25_v37 }
  0x1a   :  { %165 = vst [vmem:[#allocation1 + $0x21] ss:$2 sm:$0xff] %v684_v39  ;;  %v116_v51 = vld.sshfl [vmem:[#allocation1 + $0x30] sm:$0xff pattern:$0x75316420] }
  0x1b   :  { %167 = vst [vmem:[#allocation1 + $0x30] ss:$2 sm:$0xff] %v27_v41 }
  0x1c   :  { %169 = vst [vmem:[#allocation1 + $0x31] ss:$2 sm:$0xff] %v28_v44 }
  0x1d   :  { %v170_v52 = vld.sshfl [vmem:[#allocation1] sm:$0xff pattern:$0x75316420]  ;;  %497 = vmatmul.msk.f32.gmra.mxu0 %vm117_vm0, %v114_v49 }
  0x1e   :  { %222 = vst [vmem:[#allocation1] ss:$2 sm:$0xff] %v648_v26  ;;  %500 = vmatmul.msk.f32.vlgmr.msra.gmra.mxu1 %vm117_vm0, %v170_v52 }
  0x1f   :  { %224 = vst [vmem:[#allocation1 + $0x1] ss:$2 sm:$0xff] %v653_v27  ;;  %v171_v54 = vld.sshfl [vmem:[#allocation1 + $0x10] sm:$0xff pattern:$0x75316420] }
  0x20   :  { %226 = vst [vmem:[#allocation1 + $0x10] ss:$2 sm:$0xff] %v675_v36 }
  0x21   :  { %228 = vst [vmem:[#allocation1 + $0x11] ss:$2 sm:$0xff] %v24_v53  ;;  %v172_v55 = vld.sshfl [vmem:[#allocation1 + $0x20] sm:$0xff pattern:$0x75316420] }
  0x22   :  { %230 = vst [vmem:[#allocation1 + $0x20] ss:$2 sm:$0xff] %v684_v39 }
  0x23   :  { %232 = vst [vmem:[#allocation1 + $0x21] ss:$2 sm:$0xff] %v27_v41  ;;  %v173_v57 = vld.sshfl [vmem:[#allocation1 + $0x30] sm:$0xff pattern:$0x75316420] }
  0x24   :  { %234 = vst [vmem:[#allocation1 + $0x30] ss:$2 sm:$0xff] %v28_v44 }
  0x25   :  { %498 = vmatmul.msk.f32.gmra.mxu0 %vm117_vm0, %v115_v50  ;;  %236 = vst [vmem:[#allocation1 + $0x31] ss:$2 sm:$0xff] %v29_v56 }
  0x26   :  { %v237_v58 = vld.sshfl [vmem:[#allocation1] sm:$0xff pattern:$0x75316420]  ;;  %501 = vmatmul.msk.f32.gmra.mxu1 %vm117_vm0, %v171_v54 }
  0x27   :  { %512 = vmatmul.msk.f32.vlgmr.msra.gmra.mxu2 %vm117_vm0, %v237_v58  ;;  %301 = vst [vmem:[#allocation1] ss:$2 sm:$0xff] %v474_v31 }
  0x28   :  { %303 = vst [vmem:[#allocation1 + $0x1] ss:$2 sm:$0xff] %v476_v32  ;;  %v238_v60 = vld.sshfl [vmem:[#allocation1 + $0x10] sm:$0xff pattern:$0x75316420] }
  0x29   :  { %305 = vst [vmem:[#allocation1 + $0x10] ss:$2 sm:$0xff] %v478_v38 }
  0x2a   :  { %307 = vst [vmem:[#allocation1 + $0x11] ss:$2 sm:$0xff] %v516_v59  ;;  %v239_v61 = vld.sshfl [vmem:[#allocation1 + $0x20] sm:$0xff pattern:$0x75316420] }
  0x2b   :  { %309 = vst [vmem:[#allocation1 + $0x20] ss:$2 sm:$0xff] %v482_v42 }
  0x2c   :  { %311 = vst [vmem:[#allocation1 + $0x21] ss:$2 sm:$0xff] %v484_v43  ;;  %v240_v63 = vld.sshfl [vmem:[#allocation1 + $0x30] sm:$0xff pattern:$0x75316420] }
  0x2d   :  { %313 = vst [vmem:[#allocation1 + $0x30] ss:$2 sm:$0xff] %v486_v45  ;;  %499 = vmatmul.msk.f32.gmra.mxu0 %vm117_vm0, %v116_v51 }
  0x2e   :  { %502 = vmatmul.msk.f32.gmra.mxu1 %vm117_vm0, %v172_v55  ;;  %315 = vst [vmem:[#allocation1 + $0x31] ss:$2 sm:$0xff] %v518_v62 }
  0x2f   :  { %v316_v0 = vld.sshfl [vmem:[#allocation1] sm:$0xff pattern:$0x75316420]  ;;  %513 = vmatmul.msk.f32.gmra.mxu2 %vm117_vm0, %v238_v60 }
  0x30   :  { %528 = vmatmul.msk.f32.vlgmr.msra.gmra.mxu3 %vm117_vm0, %v316_v0 }
  0x31   :  { %v317_v1 = vld.sshfl [vmem:[#allocation1 + $0x10] sm:$0xff pattern:$0x75316420] }
  0x33   :  { %v318_v2 = vld.sshfl [vmem:[#allocation1 + $0x20] sm:$0xff pattern:$0x75316420] }
  0x35   :  { %v319_v3 = vld.sshfl [vmem:[#allocation1 + $0x30] sm:$0xff pattern:$0x75316420] }
  0x36   :  { %503 = vmatmul.msk.f32.gmra.mxu1 %vm117_vm0, %v173_v57 }
  0x37   :  { %514 = vmatmul.msk.f32.gmra.mxu2 %vm117_vm0, %v239_v61 }
  0x38   :  { %529 = vmatmul.msk.f32.gmra.mxu3 %vm117_vm0, %v317_v1 }
  0x3f   :  { %515 = vmatmul.msk.f32.gmra.mxu2 %vm117_vm0, %v240_v63 }
  0x40   :  { %530 = vmatmul.msk.f32.gmra.mxu3 %vm117_vm0, %v318_v2 }
  0x48   :  { %531 = vmatmul.msk.f32.gmra.mxu3 %vm117_vm0, %v319_v3 }
  0x92   :  { %v143_v4 = vpop.f32.mrf.mxu0 }
  0x9a   :  { %v146_v7 = vpop.f32.mrf.mxu0 }
  0x9b   :  { %v199_v5 = vpop.f32.mrf.mxu1 }
  0x9c   :  { %v200_v12 = vadd.f32 %v199_v5, %v143_v4 }
  0xa2   :  { %v149_v13 = vpop.f32.mrf.mxu0 }
  0xa3   :  { %v202_v8 = vpop.f32.mrf.mxu1 }
  0xa4   :  { %v203_v11 = vadd.f32 %v202_v8, %v146_v7 }
  0xaa   :  { %v266_v6 = vpop.f32.mrf.mxu2  ;;  %v152_v25 = vpop.f32.mrf.mxu0 }
  0xab   :  { %v205_v14 = vpop.f32.mrf.mxu1  ;;  %v278_v16 = vadd.f32 %v266_v6, %v200_v12 }
  0xac   :  { %v206_v20 = vadd.f32 %v205_v14, %v149_v13 }
  0xb2   :  { %v269_v9 = vpop.f32.mrf.mxu2 }
  0xb3   :  { %v345_v10 = vpop.f32.mrf.mxu3  ;;  %v279_v15 = vadd.f32 %v269_v9, %v203_v11  ;;  %v208_v26 = vpop.f32.mrf.mxu1 }
  0xb4   :  { %v357_v21 = vadd.f32 %v345_v10, %v278_v16  ;;  %v209_v31 = vadd.f32 %v208_v26, %v152_v25  ;;  %v533_v26 = vld [vmem:[%s795_s3] ss:$0 sm:$0xff] }
  0xb6   :  { %v365_v27 = vadd.f32 %v532_v22, %v357_v21 }
  0xb8   :  { %v369_v33 = vmul.f32 0.2, %v365_v27 }
  0xba   :  { %v272_v18 = vpop.f32.mrf.mxu2  ;;  %v373_v38 = vmax.f32 %v365_v27, %v369_v33 }
  0xbb   :  { %v348_v17 = vpop.f32.mrf.mxu3  ;;  %v280_v24 = vadd.f32 %v272_v18, %v206_v20 }
  0xbc   :  { %v358_v19 = vadd.f32 %v348_v17, %v279_v15  ;;  %v391_v43 = vmul.f32 %v373_v38, %v373_v38  ;;  %v378_v47 = vsel %vm377_vm1, %v373_v38, 0.0 }
  0xbe   :  { %v366_v23 = vadd.f32 %v532_v22, %v358_v19  ;;  %v395_v52 = vsel %vm377_vm1, %v391_v43, 0.0 }
  0xc0   :  { %v370_v29 = vmul.f32 0.2, %v366_v23 }
  0xc2   :  { %v275_v32 = vpop.f32.mrf.mxu2  ;;  %v740_v35 = vmax.f32 %v366_v23, %v370_v29 }
  0xc3   :  { %v351_v28 = vpop.f32.mrf.mxu3  ;;  %v281_v37 = vadd.f32 %v275_v32, %v209_v31  ;;  %v534_v32 = vld [vmem:[%s796_s4] ss:$0 sm:$0xff] }
  0xc4   :  { %v359_v30 = vadd.f32 %v351_v28, %v280_v24  ;;  %v392_v41 = vmul.f32 %v740_v35, %v740_v35  ;;  %v379_v44 = vsel %vm377_vm1, %v740_v35, 0.0 }
  0xc5   :  { %v380_v51 = vadd.f32 %v379_v44, %v378_v47 }
  0xc6   :  { %v367_v34 = vadd.f32 %v532_v22, %v359_v30  ;;  %v396_v48 = vsel %vm377_vm1, %v392_v41, 0.0 }
  0xc7   :  { %v397_v55 = vadd.f32 %v396_v48, %v395_v52 }
  0xc8   :  { %v371_v36 = vmul.f32 0.2, %v367_v34 }
  0xca   :  { %v375_v39 = vmax.f32 %v367_v34, %v371_v36 }
  0xcb   :  { %v354_v40 = vpop.f32.mrf.mxu3 }
  0xcc   :  { %v360_v42 = vadd.f32 %v354_v40, %v281_v37  ;;  %v393_v45 = vmul.f32 %v375_v39, %v375_v39  ;;  %v381_v49 = vsel %vm377_vm1, %v375_v39, 0.0 }
  0xcd   :  { %v382_v56 = vadd.f32 %v381_v49, %v380_v51 }
  0xce   :  { %v368_v46 = vadd.f32 %v532_v22, %v360_v42  ;;  %v398_v53 = vsel %vm377_vm1, %v393_v45, 0.0 }
  0xcf   :  { %v399_v59 = vadd.f32 %v398_v53, %v397_v55 }
  0xd0   :  { %v372_v50 = vmul.f32 0.2, %v368_v46 }
  0xd2   :  { %v376_v54 = vmax.f32 %v368_v46, %v372_v50 }
  0xd4   :  { %v383_v57 = vsel %vm377_vm1, %v376_v54, 0.0  ;;  %v394_v58 = vmul.f32 %v376_v54, %v376_v54 }
  0xd5   :  { %v384_v60 = vadd.f32 %v383_v57, %v382_v56 }
  0xd6   :  { %v400_v61 = vsel %vm377_vm1, %v394_v58, 0.0 }
  0xd7   :  { %v385_v62 = vrot.slane %v384_v60, 4  ;;  %v401_v63 = vadd.f32 %v400_v61, %v399_v59 }
  0xd9   :  { %v386_v0 = vadd.f32 %v385_v62, %v384_v60  ;;  %v402_v1 = vrot.slane %v401_v63, 4 }
  0xdb   :  { %v387_v2 = vrot.slane %v386_v0, 2  ;;  %v403_v3 = vadd.f32 %v402_v1, %v401_v63 }
  0xdd   :  { %v388_v4 = vadd.f32 %v387_v2, %v386_v0  ;;  %v404_v5 = vrot.slane %v403_v3, 2 }
  0xdf   :  { %v389_v6 = vrot.slane %v388_v4, 1  ;;  %v405_v7 = vadd.f32 %v404_v5, %v403_v3 }
  0xe1   :  { %v390_v8 = vadd.f32 %v389_v6, %v388_v4  ;;  %v406_v9 = vrot.slane %v405_v7, 1 }
  0xe3   :  { %v407_v10 = vadd.f32 %v406_v9, %v405_v7  ;;  %v408_v11 = vmul.f32 0.03125, %v390_v8 }
  0xe5   :  { %v409_v12 = vmul.f32 0.03125, %v407_v10  ;;  %v410_v13 = vmul.f32 %v408_v11, %v408_v11  ;;  %v412_v22 = vsub.f32 %v373_v38, %v408_v11  ;;  %v413_v23 = vsub.f32 %v740_v35, %v408_v11 }
  0xe6   :  { %v414_v24 = vsub.f32 %v375_v39, %v408_v11  ;;  %v415_v25 = vsub.f32 %v376_v54, %v408_v11 }
  0xe7   :  { %v411_v14 = vsub.f32 %v409_v12, %v410_v13 }
  0xe9   :  { %v416_v15 = vadd.f32 0.8, %v411_v14 }
  0xeb   :  { %535 = vrsqrt.f32 %v416_v15  ;;  %vm423_vm3 = vweird.f32 %v416_v15 }
  0xf1   :  { %v536_v16 = vpop.eup %535 }
  0xf2   :  { %v418_v17 = vmul.f32 %v536_v16, %v416_v15  ;;  %vm424_vm2 = vweird.f32 %v536_v16 }
  0xf3   :  { %vm425_vm4 = vmor %vm423_vm3, %vm424_vm2 }
  0xf4   :  { %v419_v18 = vmul.f32 %v536_v16, %v418_v17 }
  0xf6   :  { %v420_v19 = vmul.f32 0.5, %v419_v18 }
  0xf8   :  { %v421_v20 = vsub.f32 1.5, %v420_v19 }
  0xfa   :  { %v422_v21 = vmul.f32 %v536_v16, %v421_v20 }
  0xfc   :  { %v426_v27 = vsel %vm425_vm4, %v536_v16, %v422_v21 }
  0xfd   :  { %v427_v28 = vmul.f32 %v426_v27, %v412_v22  ;;  %v428_v29 = vmul.f32 %v426_v27, %v413_v23  ;;  %v429_v30 = vmul.f32 %v426_v27, %v414_v24  ;;  %v430_v31 = vmul.f32 %v426_v27, %v415_v25 }
  0xff   :  { %v435_v33 = vmul.f32 %v533_v26, %v427_v28  ;;  %v436_v34 = vmul.f32 %v533_v26, %v428_v29  ;;  %v437_v36 = vmul.f32 %v533_v26, %v429_v30  ;;  %v438_v35 = vmul.f32 %v533_v26, %v430_v31 }
 0x101   :  { %v443_v37 = vadd.f32 %v534_v32, %v435_v33  ;;  %v444_v38 = vadd.f32 %v534_v32, %v436_v34  ;;  %v445_v39 = vadd.f32 %v534_v32, %v437_v36  ;;  %v446_v40 = vadd.f32 %v534_v32, %v438_v35 }
 0x103   :  { %v451_v41 = vrot.slane %v443_v37, 4  ;;  %v452_v42 = vrot.slane %v444_v38, 4  ;;  %460 = vst.msk [vmem:[%s797_s5] sm:$0xf] %vm459_vm5, %v443_v37  ;;  %v453_v43 = vrot.slane %v445_v39, 4  ;;  %v454_v44 = vrot.slane %v446_v40, 4 }
 0x104   :  { %462 = vst.msk [vmem:[%s797_s5 + $0x8] sm:$0xf] %vm459_vm5, %v444_v38 }
 0x105   :  { %461 = vst.msk [vmem:[%s797_s5 + $0x4] sm:$0xf] %vm459_vm5, %v451_v41 }
 0x106   :  { %463 = vst.msk [vmem:[%s797_s5 + $0xc] sm:$0xf] %vm459_vm5, %v452_v42 }
 0x107   :  { %464 = vst.msk [vmem:[%s797_s5 + $0x10] sm:$0xf] %vm459_vm5, %v445_v39 }
 0x108   :  { %465 = vst.msk [vmem:[%s797_s5 + $0x14] sm:$0xf] %vm459_vm5, %v453_v43 }
 0x109   :  { %466 = vst.msk [vmem:[%s797_s5 + $0x18] sm:$0xf] %vm459_vm5, %v446_v40 }
 0x10a   :  { %467 = vst.msk [vmem:[%s797_s5 + $0x1c] sm:$0xf] %vm459_vm5, %v454_v44 }

// kernel: discriminator_forward.8
= control target key start
LH: loop header
LB: loop body
LE: loop exit
PB: predicated region body
PF: predicated region fallthrough
CT: control target
= control target key end

     0   :  { %vm261_vm0 = vcmask 523264   ;;  %vm311_vm4 = vcmask 517120   ;;  %s656_s1 = inlined_call_operand.vmem [shape: f32[2,2,128,64], index: 1, kind: input, shape index: {}]   ;;  %s657_s0 = inlined_call_operand.vmem [shape: f32[2,3,3,128], index: 0, kind: input, shape index: {}]   ;;  %s658_s2 = inlined_call_operand.vmem [shape: f32[1,64], index: 2, kind: input, shape index: {}]   ;;  %s659_s3 = inlined_call_operand.vmem [shape: f32[1,64], index: 3, kind: input, shape index: {}]   ;;  %s660_s4 = inlined_call_operand.vmem [shape: f32[1,64], index: 4, kind: input, shape index: {}]   ;;  %s661_s5 = inlined_call_operand.vmem [shape: f32[2,2,2,64], index: 5, kind: output, shape index: {}]  }
   0x1   :  { %v359_v0 = vld [vmem:[%s656_s1 + $0x178] sm:$0xff]  ;;  %v358_v1 = vld [vmem:[%s656_s1 + $0x170] sm:$0xff]  ;;  %v357_v5 = vld [vmem:[%s656_s1 + $0x168] sm:$0xff] }
   0x2   :  { %v379_v2 = vld [vmem:[%s656_s1 + $0x1f8] sm:$0xff]  ;;  %176 = vmatpush.msra.mxu2 %v359_v0  ;;  %v378_v6 = vld [vmem:[%s656_s1 + $0x1f0] sm:$0xff]  ;;  %v377_v9 = vld [vmem:[%s656_s1 + $0x1e8] sm:$0xff] }
   0x3   :  { %233 = vmatpush.msra.mxu3 %v379_v2  ;;  %v343_v3 = vld [vmem:[%s656_s1 + $0xf8] sm:$0xff]  ;;  %v342_v7 = vld [vmem:[%s656_s1 + $0xf0] sm:$0xff]  ;;  %v341_v10 = vld [vmem:[%s656_s1 + $0xe8] sm:$0xff] }
   0x4   :  { %v41_v4 = vld [vmem:[%s656_s1 + $0x78] sm:$0xff]  ;;  %99 = vmatpush.msra.mxu0 %v343_v3  ;;  %v40_v8 = vld [vmem:[%s656_s1 + $0x70] sm:$0xff]  ;;  %177 = vmatpush.msra.mxu2 %v358_v1  ;;  %v356_v11 = vld [vmem:[%s656_s1 + $0x160] sm:$0xff] }
   0x5   :  { %128 = vmatpush.msra.mxu1 %v41_v4  ;;  %234 = vmatpush.msra.mxu3 %v378_v6  ;;  %v39_v12 = vld [vmem:[%s656_s1 + $0x68] sm:$0xff]  ;;  %v376_v13 = vld [vmem:[%s656_s1 + $0x1e0] sm:$0xff]  ;;  %v355_v16 = vld [vmem:[%s656_s1 + $0x158] sm:$0xff] }
   0x6   :  { %100 = vmatpush.msra.mxu0 %v342_v7  ;;  %178 = vmatpush.msra.mxu2 %v357_v5  ;;  %v340_v14 = vld [vmem:[%s656_s1 + $0xe0] sm:$0xff]  ;;  %v375_v17 = vld [vmem:[%s656_s1 + $0x1d8] sm:$0xff]  ;;  %v354_v20 = vld [vmem:[%s656_s1 + $0x150] sm:$0xff] }
   0x7   :  { %129 = vmatpush.msra.mxu1 %v40_v8  ;;  %235 = vmatpush.msra.mxu3 %v377_v9  ;;  %v38_v15 = vld [vmem:[%s656_s1 + $0x60] sm:$0xff]  ;;  %v339_v18 = vld [vmem:[%s656_s1 + $0xd8] sm:$0xff]  ;;  %v374_v21 = vld [vmem:[%s656_s1 + $0x1d0] sm:$0xff] }
   0x8   :  { %101 = vmatpush.msra.mxu0 %v341_v10  ;;  %179 = vmatpush.msra.mxu2 %v356_v11  ;;  %v37_v19 = vld [vmem:[%s656_s1 + $0x58] sm:$0xff]  ;;  %v338_v22 = vld [vmem:[%s656_s1 + $0xd0] sm:$0xff]  ;;  %v353_v24 = vld [vmem:[%s656_s1 + $0x148] sm:$0xff] }
   0x9   :  { %130 = vmatpush.msra.mxu1 %v39_v12  ;;  %236 = vmatpush.msra.mxu3 %v376_v13  ;;  %v36_v23 = vld [vmem:[%s656_s1 + $0x50] sm:$0xff]  ;;  %v373_v25 = vld [vmem:[%s656_s1 + $0x1c8] sm:$0xff]  ;;  %v352_v28 = vld [vmem:[%s656_s1 + $0x140] sm:$0xff] }
   0xa   :  { %102 = vmatpush.msra.mxu0 %v340_v14  ;;  %180 = vmatpush.msra.mxu2 %v355_v16  ;;  %v337_v26 = vld [vmem:[%s656_s1 + $0xc8] sm:$0xff]  ;;  %v372_v29 = vld [vmem:[%s656_s1 + $0x1c0] sm:$0xff]  ;;  %v351_v32 = vld [vmem:[%s656_s1 + $0x138] sm:$0xff] }
   0xb   :  { %131 = vmatpush.msra.mxu1 %v38_v15  ;;  %237 = vmatpush.msra.mxu3 %v375_v17  ;;  %v35_v27 = vld [vmem:[%s656_s1 + $0x48] sm:$0xff]  ;;  %v336_v30 = vld [vmem:[%s656_s1 + $0xc0] sm:$0xff]  ;;  %v371_v33 = vld [vmem:[%s656_s1 + $0x1b8] sm:$0xff] }
   0xc   :  { %103 = vmatpush.msra.mxu0 %v339_v18  ;;  %181 = vmatpush.msra.mxu2 %v354_v20  ;;  %v34_v31 = vld [vmem:[%s656_s1 + $0x40] sm:$0xff]  ;;  %v335_v34 = vld [vmem:[%s656_s1 + $0xb8] sm:$0xff]  ;;  %v350_v36 = vld [vmem:[%s656_s1 + $0x130] sm:$0xff] }
   0xd   :  { %132 = vmatpush.msra.mxu1 %v37_v19  ;;  %238 = vmatpush.msra.mxu3 %v374_v21  ;;  %v33_v35 = vld [vmem:[%s656_s1 + $0x38] sm:$0xff]  ;;  %v370_v37 = vld [vmem:[%s656_s1 + $0x1b0] sm:$0xff]  ;;  %v349_v40 = vld [vmem:[%s656_s1 + $0x128] sm:$0xff] }
   0xe   :  { %104 = vmatpush.msra.mxu0 %v338_v22  ;;  %182 = vmatpush.msra.mxu2 %v353_v24  ;;  %v334_v38 = vld [vmem:[%s656_s1 + $0xb0] sm:$0xff]  ;;  %v348_v41 = vld [vmem:[%s656_s1 + $0x120] sm:$0xff]  ;;  %v369_v42 = vld [vmem:[%s656_s1 + $0x1a8] sm:$0xff] }
   0xf   :  { %133 = vmatpush.msra.mxu1 %v36_v23  ;;  %239 = vmatpush.msra.mxu3 %v373_v25  ;;  %v32_v39 = vld [vmem:[%s656_s1 + $0x30] sm:$0xff]  ;;  %v333_v43 = vld [vmem:[%s656_s1 + $0xa8] sm:$0xff]  ;;  %v20_v45 = vld [vmem:[%s657_s0] sm:$0x7] }
  0x10   :  { %105 = vmatpush.msra.mxu0 %v337_v26  ;;  %183 = vmatpush.msra.mxu2 %v352_v28  ;;  %v31_v44 = vld [vmem:[%s656_s1 + $0x28] sm:$0xff]  ;;  %v368_v46 = vld [vmem:[%s656_s1 + $0x1a0] sm:$0xff]  ;;  %v573_v51 = vld [vmem:[%s657_s0 + $0x10] sm:$0x7]  ;;  %v320_v52 = vrot.slane %v20_v45, 9 }
  0x11   :  { %134 = vmatpush.msra.mxu1 %v35_v27  ;;  %240 = vmatpush.msra.mxu3 %v372_v29  ;;  %v559_v47 = vld [vmem:[%s657_s0 + $0x4] sm:$0x7]  ;;  %v23_v48 = vld [vmem:[%s657_s0 + $0xc] sm:$0x7]  ;;  %v347_v54 = vld [vmem:[%s656_s1 + $0x118] sm:$0xff]  ;;  %v326_v57 = vrot.slane %v573_v51, 9 }
  0x12   :  { %106 = vmatpush.msra.mxu0 %v336_v30  ;;  %184 = vmatpush.msra.mxu2 %v351_v32  ;;  %v332_v49 = vld [vmem:[%s656_s1 + $0xa0] sm:$0xff]  ;;  %v322_v53 = vrot.slane %v559_v47, 9  ;;  %v367_v55 = vld [vmem:[%s656_s1 + $0x198] sm:$0xff]  ;;  %v324_v56 = vrot.slane %v23_v48, 9  ;;  %90 = vst [vmem:[#allocation1] ss:$4 sm:$0xff] %v320_v52 }
  0x13   :  { %135 = vmatpush.msra.mxu1 %v34_v31  ;;  %241 = vmatpush.msra.mxu3 %v371_v33  ;;  %v30_v50 = vld [vmem:[%s656_s1 + $0x20] sm:$0xff]  ;;  %v331_v58 = vld [vmem:[%s656_s1 + $0x98] sm:$0xff]  ;;  %v346_v60 = vld [vmem:[%s656_s1 + $0x110] sm:$0xff]  ;;  %96 = vst [vmem:[#allocation1 + $0x3] ss:$4 sm:$0xff] %v326_v57 }
  0x14   :  { %107 = vmatpush.msra.mxu0 %v335_v34  ;;  %185 = vmatpush.msra.mxu2 %v350_v36  ;;  %v29_v59 = vld [vmem:[%s656_s1 + $0x18] sm:$0xff]  ;;  %v366_v61 = vld [vmem:[%s656_s1 + $0x190] sm:$0xff]  ;;  %92 = vst [vmem:[#allocation1 + $0x1] ss:$4 sm:$0xff] %v322_v53  ;;  %v345_v0 = vld [vmem:[%s656_s1 + $0x108] sm:$0xff] }
  0x15   :  { %136 = vmatpush.msra.mxu1 %v33_v35  ;;  %242 = vmatpush.msra.mxu3 %v370_v37  ;;  %v330_v62 = vld [vmem:[%s656_s1 + $0x90] sm:$0xff]  ;;  %94 = vst [vmem:[#allocation1 + $0x2] ss:$4 sm:$0xff] %v324_v56  ;;  %v365_v1 = vld [vmem:[%s656_s1 + $0x188] sm:$0xff]  ;;  %v344_v4 = vld [vmem:[%s656_s1 + $0x100] sm:$0xff] }
  0x16   :  { %108 = vmatpush.msra.mxu0 %v334_v38  ;;  %186 = vmatpush.msra.mxu2 %v349_v40  ;;  %v28_v63 = vld [vmem:[%s656_s1 + $0x10] sm:$0xff]  ;;  %v329_v2 = vld [vmem:[%s656_s1 + $0x88] sm:$0xff]  ;;  %v364_v5 = vld [vmem:[%s656_s1 + $0x180] sm:$0xff] }
  0x17   :  { %137 = vmatpush.msra.mxu1 %v32_v39  ;;  %243 = vmatpush.msra.mxu3 %v369_v42  ;;  %v27_v3 = vld [vmem:[%s656_s1 + $0x8] sm:$0xff]  ;;  %v328_v7 = vld [vmem:[%s656_s1 + $0x80] sm:$0xff]  ;;  %v25_v11 = vld [vmem:[%s657_s0 + $0x14] sm:$0x7] }
  0x18   :  { %109 = vmatpush.msra.mxu0 %v333_v43  ;;  %187 = vmatpush.msra.mxu2 %v348_v41  ;;  %v26_v8 = vld [vmem:[%s656_s1] sm:$0xff]  ;;  %v22_v9 = vld [vmem:[%s657_s0 + $0x8] sm:$0x7]  ;;  %v362_v14 = vrot.slane %v25_v11, 9 }
  0x19   :  { %138 = vmatpush.msra.mxu1 %v31_v44  ;;  %244 = vmatpush.msra.mxu3 %v368_v46  ;;  %v360_v12 = vrot.slane %v22_v9, 9  ;;  %v380_v21 = vld [vmem:[%s658_s2] ss:$0 sm:$0xff] }
  0x1a   :  { %110 = vmatpush.msra.mxu0 %v332_v49  ;;  %188 = vmatpush.msra.mxu2 %v347_v54  ;;  %v381_v54 = vld [vmem:[%s659_s3] ss:$0 sm:$0xff] }
  0x1b   :  { %139 = vmatpush.msra.mxu1 %v30_v50  ;;  %245 = vmatpush.msra.mxu3 %v367_v55 }
  0x1c   :  { %111 = vmatpush.msra.mxu0 %v331_v58  ;;  %189 = vmatpush.msra.mxu2 %v346_v60  ;;  %v97_v6 = vld.sshfl [vmem:[#allocation1] sm:$0xff pattern:$0x73625140] }
  0x1d   :  { %140 = vmatpush.msra.mxu1 %v29_v59  ;;  %246 = vmatpush.msra.mxu3 %v366_v61  ;;  %119 = vst [vmem:[#allocation1] ss:$4 sm:$0xff] %v20_v45 }
  0x1e   :  { %112 = vmatpush.msra.mxu0 %v330_v62  ;;  %190 = vmatpush.msra.mxu2 %v345_v0  ;;  %121 = vst [vmem:[#allocation1 + $0x1] ss:$4 sm:$0xff] %v559_v47 }
  0x1f   :  { %141 = vmatpush.msra.mxu1 %v28_v63  ;;  %247 = vmatpush.msra.mxu3 %v365_v1  ;;  %123 = vst [vmem:[#allocation1 + $0x2] ss:$4 sm:$0xff] %v23_v48 }
  0x20   :  { %113 = vmatpush.msra.mxu0 %v329_v2  ;;  %191 = vmatpush.msra.mxu2 %v344_v4  ;;  %125 = vst [vmem:[#allocation1 + $0x3] ss:$4 sm:$0xff] %v573_v51 }
  0x21   :  { %142 = vmatpush.msra.mxu1 %v27_v3  ;;  %248 = vmatpush.msra.mxu3 %v364_v5 }
  0x22   :  { %114 = vmatpush.msra.mxu0 %v328_v7 }
  0x23   :  { %143 = vmatpush.msra.mxu1 %v26_v8  ;;  %115 = vmatmul.f32.vlgmr.msra.gmra.mxu0 %v97_v6 }
  0x27   :  { %v126_v10 = vld.sshfl [vmem:[#allocation1] sm:$0xff pattern:$0x73625140] }
  0x28   :  { %167 = vst [vmem:[#allocation1] ss:$4 sm:$0xff] %v559_v47  ;;  %144 = vmatmul.f32.vlgmr.msra.gmra.mxu1 %v126_v10 }
  0x29   :  { %169 = vst [vmem:[#allocation1 + $0x1] ss:$4 sm:$0xff] %v22_v9 }
  0x2a   :  { %171 = vst [vmem:[#allocation1 + $0x2] ss:$4 sm:$0xff] %v573_v51 }
  0x2b   :  { %173 = vst [vmem:[#allocation1 + $0x3] ss:$4 sm:$0xff] %v25_v11 }
  0x32   :  { %v174_v13 = vld.sshfl [vmem:[#allocation1] sm:$0xff pattern:$0x73625140] }
  0x33   :  { %192 = vmatmul.f32.vlgmr.msra.gmra.mxu2 %v174_v13  ;;  %224 = vst [vmem:[#allocation1] ss:$4 sm:$0xff] %v322_v53 }
  0x34   :  { %226 = vst [vmem:[#allocation1 + $0x1] ss:$4 sm:$0xff] %v360_v12 }
  0x35   :  { %228 = vst [vmem:[#allocation1 + $0x2] ss:$4 sm:$0xff] %v326_v57  ;;  %v382_v57 = vld [vmem:[%s660_s4] ss:$0 sm:$0xff] }
  0x36   :  { %230 = vst [vmem:[#allocation1 + $0x3] ss:$4 sm:$0xff] %v362_v14 }
  0x3d   :  { %v231_v15 = vld.sshfl [vmem:[#allocation1] sm:$0xff pattern:$0x73625140] }
  0x3e   :  { %249 = vmatmul.f32.vlgmr.msra.gmra.mxu3 %v231_v15 }
  0xa0   :  { %v116_v16 = vpop.f32.mrf.mxu0 }
  0xa5   :  { %v145_v17 = vpop.f32.mrf.mxu1 }
  0xa6   :  { %v146_v18 = vadd.f32 %v145_v17, %v116_v16 }
  0xb6   :  { %v193_v19 = vpop.f32.mrf.mxu2 }
  0xb7   :  { %v196_v20 = vadd.f32 %v193_v19, %v146_v18 }
  0xc1   :  { %v250_v22 = vpop.f32.mrf.mxu3 }
  0xc2   :  { %v253_v23 = vadd.f32 %v250_v22, %v196_v20 }
  0xc4   :  { %v258_v24 = vadd.f32 %v380_v21, %v253_v23 }
  0xc6   :  { %v259_v25 = vmul.f32 0.2, %v258_v24 }
  0xc8   :  { %v260_v26 = vmax.f32 %v258_v24, %v259_v25 }
  0xca   :  { %v262_v27 = vsel %vm261_vm0, %v260_v26, 0.0  ;;  %v269_v28 = vmul.f32 %v260_v26, %v260_v26 }
  0xcb   :  { %v263_v29 = vrot.slane %v262_v27, 4 }
  0xcc   :  { %v270_v30 = vsel %vm261_vm0, %v269_v28, 0.0 }
  0xcd   :  { %v264_v31 = vadd.f32 %v263_v29, %v262_v27  ;;  %v271_v32 = vrot.slane %v270_v30, 4 }
  0xcf   :  { %v265_v33 = vrot.slane %v264_v31, 2  ;;  %v272_v34 = vadd.f32 %v271_v32, %v270_v30 }
  0xd1   :  { %v266_v35 = vadd.f32 %v265_v33, %v264_v31  ;;  %v273_v36 = vrot.slane %v272_v34, 2 }
  0xd3   :  { %v267_v37 = vrot.slane %v266_v35, 1  ;;  %v274_v38 = vadd.f32 %v273_v36, %v272_v34 }
  0xd5   :  { %v268_v39 = vadd.f32 %v267_v37, %v266_v35  ;;  %v275_v40 = vrot.slane %v274_v38, 1 }
  0xd7   :  { %v276_v41 = vadd.f32 %v275_v40, %v274_v38  ;;  %v277_v42 = vmul.f32 0.125, %v268_v39 }
  0xd9   :  { %v278_v43 = vmul.f32 0.125, %v276_v41  ;;  %v279_v44 = vmul.f32 %v277_v42, %v277_v42  ;;  %v281_v53 = vsub.f32 %v260_v26, %v277_v42 }
  0xdb   :  { %v280_v45 = vsub.f32 %v278_v43, %v279_v44 }
  0xdd   :  { %v282_v46 = vadd.f32 0.8, %v280_v45 }
  0xdf   :  { %383 = vrsqrt.f32 %v282_v46  ;;  %vm289_vm2 = vweird.f32 %v282_v46 }
  0xe5   :  { %v384_v47 = vpop.eup %383 }
  0xe6   :  { %v284_v48 = vmul.f32 %v384_v47, %v282_v46  ;;  %vm290_vm1 = vweird.f32 %v384_v47 }
  0xe7   :  { %vm291_vm3 = vmor %vm289_vm2, %vm290_vm1 }
  0xe8   :  { %v285_v49 = vmul.f32 %v384_v47, %v284_v48 }
  0xea   :  { %v286_v50 = vmul.f32 0.5, %v285_v49 }
  0xec   :  { %v287_v51 = vsub.f32 1.5, %v286_v50 }
  0xee   :  { %v288_v52 = vmul.f32 %v384_v47, %v287_v51 }
  0xf0   :  { %v292_v55 = vsel %vm291_vm3, %v384_v47, %v288_v52 }
  0xf1   :  { %v293_v56 = vmul.f32 %v292_v55, %v281_v53 }
  0xf3   :  { %v298_v58 = vmul.f32 %v381_v54, %v293_v56 }
  0xf5   :  { %v303_v59 = vadd.f32 %v382_v57, %v298_v58 }
  0xf7   :  { %v305_v60 = vrot.slane %v303_v59, 2  ;;  %v306_v61 = vrot.slane %v303_v59, 4  ;;  %v307_v62 = vrot.slane %v303_v59, 6  ;;  %312 = vst.msk [vmem:[%s661_s5] sm:$0x3] %vm311_vm4, %v303_v59 }
  0xf9   :  { %313 = vst.msk [vmem:[%s661_s5 + $0x2] sm:$0x3] %vm311_vm4, %v305_v60 }
  0xfa   :  { %314 = vst.msk [vmem:[%s661_s5 + $0x4] sm:$0x3] %vm311_vm4, %v306_v61 }
  0xfb   :  { %315 = vst.msk [vmem:[%s661_s5 + $0x6] sm:$0x3] %vm311_vm4, %v307_v62 }

// kernel: discriminator_forward.9
= control target key start
LH: loop header
LB: loop body
LE: loop exit
PB: predicated region body
PF: predicated region fallthrough
CT: control target
= control target key end

     0   :  { %vm103_vm0 = vcmask 1041409   ;;  %vm369_vm1 = vcmask 1041408   ;;  %vm471_vm8 = vcmask 1024   ;;  %s1090_s1 = inlined_call_operand.vmem [shape: f32[2,2,256,128], index: 1, kind: input, shape index: {}]   ;;  %s1091_s0 = inlined_call_operand.vmem [shape: f32[2,2,2,256], index: 0, kind: input, shape index: {}]   ;;  %s1092_s2 = inlined_call_operand.vmem [shape: f32[1,128], index: 2, kind: input, shape index: {}]   ;;  %s1093_s3 = inlined_call_operand.vmem [shape: f32[1,128], index: 3, kind: input, shape index: {}]   ;;  %s1094_s4 = inlined_call_operand.vmem [shape: f32[1,128], index: 4, kind: input, shape index: {}]   ;;  %s1095_s5 = inlined_call_operand.vmem [shape: f32[128,1], index: 5, kind: input, shape index: {}]   ;;  %s1096_s6 = inlined_call_operand.<no memory space> [shape: f32[1,1], index: 6, kind: input, shape index: {}]   ;;  %s1097_s7 = inlined_call_operand.vmem [shape: f32[2,1], index: 7, kind: output, shape index: {}]  }
   0x1   :  { %v492_v0 = vld [vmem:[%s1090_s1 + $0x178] sm:$0xff]  ;;  %v491_v4 = vld [vmem:[%s1090_s1 + $0x170] sm:$0xff]  ;;  %v490_v8 = vld [vmem:[%s1090_s1 + $0x168] sm:$0xff] }
   0x2   :  { %v508_v1 = vld [vmem:[%s1090_s1 + $0x1f8] sm:$0xff]  ;;  %108 = vmatpush.msra.mxu0 %v492_v0  ;;  %v507_v5 = vld [vmem:[%s1090_s1 + $0x1f0] sm:$0xff]  ;;  %v506_v9 = vld [vmem:[%s1090_s1 + $0x1e8] sm:$0xff] }
   0x3   :  { %v47_v2 = vld [vmem:[%s1090_s1 + $0x78] sm:$0xff]  ;;  %128 = vmatpush.msra.mxu1 %v508_v1  ;;  %v46_v6 = vld [vmem:[%s1090_s1 + $0x70] sm:$0xff]  ;;  %v45_v10 = vld [vmem:[%s1090_s1 + $0x68] sm:$0xff] }
   0x4   :  { %v63_v3 = vld [vmem:[%s1090_s1 + $0xf8] sm:$0xff]  ;;  %156 = vmatpush.msra.mxu2 %v47_v2  ;;  %v62_v7 = vld [vmem:[%s1090_s1 + $0xf0] sm:$0xff]  ;;  %109 = vmatpush.msra.mxu0 %v491_v4  ;;  %v61_v11 = vld [vmem:[%s1090_s1 + $0xe8] sm:$0xff] }
   0x5   :  { %176 = vmatpush.msra.mxu3 %v63_v3  ;;  %129 = vmatpush.msra.mxu1 %v507_v5  ;;  %v489_v12 = vld [vmem:[%s1090_s1 + $0x160] sm:$0xff]  ;;  %v488_v16 = vld [vmem:[%s1090_s1 + $0x158] sm:$0xff]  ;;  %v487_v20 = vld [vmem:[%s1090_s1 + $0x150] sm:$0xff] }
   0x6   :  { %157 = vmatpush.msra.mxu2 %v46_v6  ;;  %v505_v13 = vld [vmem:[%s1090_s1 + $0x1e0] sm:$0xff]  ;;  %110 = vmatpush.msra.mxu0 %v490_v8  ;;  %v504_v17 = vld [vmem:[%s1090_s1 + $0x1d8] sm:$0xff]  ;;  %v503_v21 = vld [vmem:[%s1090_s1 + $0x1d0] sm:$0xff] }
   0x7   :  { %177 = vmatpush.msra.mxu3 %v62_v7  ;;  %130 = vmatpush.msra.mxu1 %v506_v9  ;;  %v44_v14 = vld [vmem:[%s1090_s1 + $0x60] sm:$0xff]  ;;  %v43_v18 = vld [vmem:[%s1090_s1 + $0x58] sm:$0xff]  ;;  %v42_v22 = vld [vmem:[%s1090_s1 + $0x50] sm:$0xff] }
   0x8   :  { %v60_v15 = vld [vmem:[%s1090_s1 + $0xe0] sm:$0xff]  ;;  %158 = vmatpush.msra.mxu2 %v45_v10  ;;  %111 = vmatpush.msra.mxu0 %v489_v12  ;;  %v59_v19 = vld [vmem:[%s1090_s1 + $0xd8] sm:$0xff]  ;;  %v58_v23 = vld [vmem:[%s1090_s1 + $0xd0] sm:$0xff] }
   0x9   :  { %178 = vmatpush.msra.mxu3 %v61_v11  ;;  %131 = vmatpush.msra.mxu1 %v505_v13  ;;  %v486_v24 = vld [vmem:[%s1090_s1 + $0x148] sm:$0xff]  ;;  %v485_v28 = vld [vmem:[%s1090_s1 + $0x140] sm:$0xff]  ;;  %v484_v32 = vld [vmem:[%s1090_s1 + $0x138] sm:$0xff] }
   0xa   :  { %159 = vmatpush.msra.mxu2 %v44_v14  ;;  %112 = vmatpush.msra.mxu0 %v488_v16  ;;  %v502_v25 = vld [vmem:[%s1090_s1 + $0x1c8] sm:$0xff]  ;;  %v501_v29 = vld [vmem:[%s1090_s1 + $0x1c0] sm:$0xff]  ;;  %v500_v33 = vld [vmem:[%s1090_s1 + $0x1b8] sm:$0xff] }
   0xb   :  { %179 = vmatpush.msra.mxu3 %v60_v15  ;;  %132 = vmatpush.msra.mxu1 %v504_v17  ;;  %v41_v26 = vld [vmem:[%s1090_s1 + $0x48] sm:$0xff]  ;;  %v40_v30 = vld [vmem:[%s1090_s1 + $0x40] sm:$0xff]  ;;  %v39_v34 = vld [vmem:[%s1090_s1 + $0x38] sm:$0xff] }
   0xc   :  { %160 = vmatpush.msra.mxu2 %v43_v18  ;;  %113 = vmatpush.msra.mxu0 %v487_v20  ;;  %v57_v27 = vld [vmem:[%s1090_s1 + $0xc8] sm:$0xff]  ;;  %v56_v31 = vld [vmem:[%s1090_s1 + $0xc0] sm:$0xff]  ;;  %v55_v35 = vld [vmem:[%s1090_s1 + $0xb8] sm:$0xff] }
   0xd   :  { %180 = vmatpush.msra.mxu3 %v59_v19  ;;  %133 = vmatpush.msra.mxu1 %v503_v21  ;;  %v483_v36 = vld [vmem:[%s1090_s1 + $0x130] sm:$0xff]  ;;  %v482_v40 = vld [vmem:[%s1090_s1 + $0x128] sm:$0xff]  ;;  %v481_v44 = vld [vmem:[%s1090_s1 + $0x120] sm:$0xff] }
   0xe   :  { %161 = vmatpush.msra.mxu2 %v42_v22  ;;  %114 = vmatpush.msra.mxu0 %v486_v24  ;;  %v499_v37 = vld [vmem:[%s1090_s1 + $0x1b0] sm:$0xff]  ;;  %v498_v41 = vld [vmem:[%s1090_s1 + $0x1a8] sm:$0xff]  ;;  %v497_v45 = vld [vmem:[%s1090_s1 + $0x1a0] sm:$0xff] }
   0xf   :  { %181 = vmatpush.msra.mxu3 %v58_v23  ;;  %134 = vmatpush.msra.mxu1 %v502_v25  ;;  %v38_v38 = vld [vmem:[%s1090_s1 + $0x30] sm:$0xff]  ;;  %v37_v42 = vld [vmem:[%s1090_s1 + $0x28] sm:$0xff]  ;;  %v36_v46 = vld [vmem:[%s1090_s1 + $0x20] sm:$0xff] }
  0x10   :  { %162 = vmatpush.msra.mxu2 %v41_v26  ;;  %115 = vmatpush.msra.mxu0 %v485_v28  ;;  %v54_v39 = vld [vmem:[%s1090_s1 + $0xb0] sm:$0xff]  ;;  %v53_v43 = vld [vmem:[%s1090_s1 + $0xa8] sm:$0xff]  ;;  %v52_v47 = vld [vmem:[%s1090_s1 + $0xa0] sm:$0xff] }
  0x11   :  { %182 = vmatpush.msra.mxu3 %v57_v27  ;;  %135 = vmatpush.msra.mxu1 %v501_v29  ;;  %v480_v48 = vld [vmem:[%s1090_s1 + $0x118] sm:$0xff]  ;;  %v479_v52 = vld [vmem:[%s1090_s1 + $0x110] sm:$0xff]  ;;  %v478_v56 = vld [vmem:[%s1090_s1 + $0x108] sm:$0xff] }
  0x12   :  { %163 = vmatpush.msra.mxu2 %v40_v30  ;;  %116 = vmatpush.msra.mxu0 %v484_v32  ;;  %v496_v49 = vld [vmem:[%s1090_s1 + $0x198] sm:$0xff]  ;;  %v495_v53 = vld [vmem:[%s1090_s1 + $0x190] sm:$0xff]  ;;  %v494_v57 = vld [vmem:[%s1090_s1 + $0x188] sm:$0xff] }
  0x13   :  { %183 = vmatpush.msra.mxu3 %v56_v31  ;;  %136 = vmatpush.msra.mxu1 %v500_v33  ;;  %v35_v50 = vld [vmem:[%s1090_s1 + $0x18] sm:$0xff]  ;;  %v34_v54 = vld [vmem:[%s1090_s1 + $0x10] sm:$0xff]  ;;  %v33_v58 = vld [vmem:[%s1090_s1 + $0x8] sm:$0xff] }
  0x14   :  { %164 = vmatpush.msra.mxu2 %v39_v34  ;;  %117 = vmatpush.msra.mxu0 %v483_v36  ;;  %v51_v51 = vld [vmem:[%s1090_s1 + $0x98] sm:$0xff]  ;;  %v50_v55 = vld [vmem:[%s1090_s1 + $0x90] sm:$0xff]  ;;  %v49_v59 = vld [vmem:[%s1090_s1 + $0x88] sm:$0xff] }
  0x15   :  { %184 = vmatpush.msra.mxu3 %v55_v35  ;;  %137 = vmatpush.msra.mxu1 %v499_v37  ;;  %v477_v60 = vld [vmem:[%s1090_s1 + $0x100] sm:$0xff]  ;;  %v524_v0 = vld [vmem:[%s1090_s1 + $0x278] sm:$0xff]  ;;  %v523_v4 = vld [vmem:[%s1090_s1 + $0x270] sm:$0xff] }
  0x16   :  { %165 = vmatpush.msra.mxu2 %v38_v38  ;;  %118 = vmatpush.msra.mxu0 %v482_v40  ;;  %v493_v61 = vld [vmem:[%s1090_s1 + $0x180] sm:$0xff]  ;;  %v540_v1 = vld [vmem:[%s1090_s1 + $0x2f8] sm:$0xff]  ;;  %v539_v5 = vld [vmem:[%s1090_s1 + $0x2f0] sm:$0xff] }
  0x17   :  { %185 = vmatpush.msra.mxu3 %v54_v39  ;;  %138 = vmatpush.msra.mxu1 %v498_v41  ;;  %v32_v62 = vld [vmem:[%s1090_s1] sm:$0xff]  ;;  %v556_v2 = vld [vmem:[%s1090_s1 + $0x378] sm:$0xff]  ;;  %v555_v6 = vld [vmem:[%s1090_s1 + $0x370] sm:$0xff] }
  0x18   :  { %166 = vmatpush.msra.mxu2 %v37_v42  ;;  %119 = vmatpush.msra.mxu0 %v481_v44  ;;  %v48_v63 = vld [vmem:[%s1090_s1 + $0x80] sm:$0xff]  ;;  %v572_v3 = vld [vmem:[%s1090_s1 + $0x3f8] sm:$0xff]  ;;  %v571_v7 = vld [vmem:[%s1090_s1 + $0x3f0] sm:$0xff] }
  0x19   :  { %186 = vmatpush.msra.mxu3 %v53_v43  ;;  %139 = vmatpush.msra.mxu1 %v497_v45  ;;  %v522_v8 = vld [vmem:[%s1090_s1 + $0x268] sm:$0xff]  ;;  %v521_v12 = vld [vmem:[%s1090_s1 + $0x260] sm:$0xff]  ;;  %v520_v16 = vld [vmem:[%s1090_s1 + $0x258] sm:$0xff] }
  0x1a   :  { %167 = vmatpush.msra.mxu2 %v36_v46  ;;  %120 = vmatpush.msra.mxu0 %v480_v48  ;;  %v538_v9 = vld [vmem:[%s1090_s1 + $0x2e8] sm:$0xff]  ;;  %v537_v13 = vld [vmem:[%s1090_s1 + $0x2e0] sm:$0xff]  ;;  %v536_v17 = vld [vmem:[%s1090_s1 + $0x2d8] sm:$0xff] }
  0x1b   :  { %187 = vmatpush.msra.mxu3 %v52_v47  ;;  %140 = vmatpush.msra.mxu1 %v496_v49  ;;  %v554_v10 = vld [vmem:[%s1090_s1 + $0x368] sm:$0xff]  ;;  %v553_v14 = vld [vmem:[%s1090_s1 + $0x360] sm:$0xff]  ;;  %v552_v18 = vld [vmem:[%s1090_s1 + $0x358] sm:$0xff] }
  0x1c   :  { %168 = vmatpush.msra.mxu2 %v35_v50  ;;  %121 = vmatpush.msra.mxu0 %v479_v52  ;;  %v570_v11 = vld [vmem:[%s1090_s1 + $0x3e8] sm:$0xff]  ;;  %v569_v15 = vld [vmem:[%s1090_s1 + $0x3e0] sm:$0xff]  ;;  %v568_v19 = vld [vmem:[%s1090_s1 + $0x3d8] sm:$0xff] }
  0x1d   :  { %188 = vmatpush.msra.mxu3 %v51_v51  ;;  %141 = vmatpush.msra.mxu1 %v495_v53  ;;  %v519_v20 = vld [vmem:[%s1090_s1 + $0x250] sm:$0xff]  ;;  %v518_v24 = vld [vmem:[%s1090_s1 + $0x248] sm:$0xff]  ;;  %v517_v28 = vld [vmem:[%s1090_s1 + $0x240] sm:$0xff] }
  0x1e   :  { %169 = vmatpush.msra.mxu2 %v34_v54  ;;  %122 = vmatpush.msra.mxu0 %v478_v56  ;;  %v535_v21 = vld [vmem:[%s1090_s1 + $0x2d0] sm:$0xff]  ;;  %v534_v25 = vld [vmem:[%s1090_s1 + $0x2c8] sm:$0xff]  ;;  %v533_v29 = vld [vmem:[%s1090_s1 + $0x2c0] sm:$0xff] }
  0x1f   :  { %189 = vmatpush.msra.mxu3 %v50_v55  ;;  %142 = vmatpush.msra.mxu1 %v494_v57  ;;  %v551_v22 = vld [vmem:[%s1090_s1 + $0x350] sm:$0xff]  ;;  %v550_v26 = vld [vmem:[%s1090_s1 + $0x348] sm:$0xff]  ;;  %v549_v30 = vld [vmem:[%s1090_s1 + $0x340] sm:$0xff] }
  0x20   :  { %170 = vmatpush.msra.mxu2 %v33_v58  ;;  %123 = vmatpush.msra.mxu0 %v477_v60  ;;  %v567_v23 = vld [vmem:[%s1090_s1 + $0x3d0] sm:$0xff]  ;;  %v566_v27 = vld [vmem:[%s1090_s1 + $0x3c8] sm:$0xff]  ;;  %v565_v31 = vld [vmem:[%s1090_s1 + $0x3c0] sm:$0xff] }
  0x21   :  { %190 = vmatpush.msra.mxu3 %v49_v59  ;;  %143 = vmatpush.msra.mxu1 %v493_v61  ;;  %v28_v32 = vld [vmem:[%s1091_s0] sm:$0xf]  ;;  %v30_v33 = vld [vmem:[%s1091_s0 + $0x8] sm:$0xf]  ;;  %v516_v34 = vld [vmem:[%s1090_s1 + $0x238] sm:$0xff] }
  0x22   :  { %171 = vmatpush.msra.mxu2 %v32_v62  ;;  %239 = vmatpush.msrb.mxu0 %v524_v0  ;;  %v532_v35 = vld [vmem:[%s1090_s1 + $0x2b8] sm:$0xff]  ;;  %v515_v38 = vld [vmem:[%s1090_s1 + $0x230] sm:$0xff]  ;;  %v148_v40 = vperm.slane %v28_v32, 0  ;;  %v150_v41 = vperm.slane %v30_v33, 0  ;;  %v514_v44 = vld [vmem:[%s1090_s1 + $0x228] sm:$0xff]  ;;  %v99_v46 = vperm.slane %v28_v32, 1 }
  0x23   :  { %191 = vmatpush.msra.mxu3 %v48_v63  ;;  %259 = vmatpush.msrb.mxu1 %v540_v1  ;;  %v548_v36 = vld [vmem:[%s1090_s1 + $0x338] sm:$0xff]  ;;  %v531_v39 = vld [vmem:[%s1090_s1 + $0x2b0] sm:$0xff]  ;;  %v530_v45 = vld [vmem:[%s1090_s1 + $0x2a8] sm:$0xff]  ;;  %v101_v47 = vperm.slane %v30_v33, 1  ;;  %v100_v50 = vperm.slane %v28_v32, 3  ;;  %v102_v51 = vperm.slane %v30_v33, 3 }
  0x24   :  { %321 = vmatpush.msrb.mxu2 %v556_v2  ;;  %240 = vmatpush.msrb.mxu0 %v523_v4  ;;  %v564_v37 = vld [vmem:[%s1090_s1 + $0x3b8] sm:$0xff]  ;;  %v547_v42 = vld [vmem:[%s1090_s1 + $0x330] sm:$0xff]  ;;  %v546_v48 = vld [vmem:[%s1090_s1 + $0x328] sm:$0xff]  ;;  %v149_v52 = vperm.slane %v28_v32, 2  ;;  %v151_v53 = vperm.slane %v30_v33, 2  ;;  %v152_v54 = vsel %vm103_vm0, %v150_v41, %v148_v40 }
  0x25   :  { %341 = vmatpush.msrb.mxu3 %v572_v3  ;;  %260 = vmatpush.msrb.mxu1 %v539_v5  ;;  %v563_v43 = vld [vmem:[%s1090_s1 + $0x3b0] sm:$0xff]  ;;  %v562_v49 = vld [vmem:[%s1090_s1 + $0x3a8] sm:$0xff]  ;;  %v513_v55 = vld [vmem:[%s1090_s1 + $0x220] sm:$0xff]  ;;  %v104_v59 = vsel %vm103_vm0, %v101_v47, %v99_v46  ;;  %v105_v60 = vsel %vm103_vm0, %v102_v51, %v100_v50 }
  0x26   :  { %322 = vmatpush.msrb.mxu2 %v555_v6  ;;  %241 = vmatpush.msrb.mxu0 %v522_v8  ;;  %v529_v56 = vld [vmem:[%s1090_s1 + $0x2a0] sm:$0xff]  ;;  %v153_v61 = vsel %vm103_vm0, %v151_v53, %v149_v52  ;;  %v512_v62 = vld [vmem:[%s1090_s1 + $0x218] sm:$0xff]  ;;  %v31_v3 = vld [vmem:[%s1091_s0 + $0xc] sm:$0xf] }
  0x27   :  { %342 = vmatpush.msrb.mxu3 %v571_v7  ;;  %261 = vmatpush.msrb.mxu1 %v538_v9  ;;  %v545_v57 = vld [vmem:[%s1090_s1 + $0x320] sm:$0xff]  ;;  %v528_v63 = vld [vmem:[%s1090_s1 + $0x298] sm:$0xff]  ;;  %v511_v4 = vld [vmem:[%s1090_s1 + $0x210] sm:$0xff] }
  0x28   :  { %323 = vmatpush.msrb.mxu2 %v554_v10  ;;  %242 = vmatpush.msrb.mxu0 %v521_v12  ;;  %v561_v58 = vld [vmem:[%s1090_s1 + $0x3a0] sm:$0xff]  ;;  %v544_v0 = vld [vmem:[%s1090_s1 + $0x318] sm:$0xff]  ;;  %v527_v5 = vld [vmem:[%s1090_s1 + $0x290] sm:$0xff] }
  0x29   :  { %343 = vmatpush.msrb.mxu3 %v570_v11  ;;  %262 = vmatpush.msrb.mxu1 %v537_v13  ;;  %v560_v1 = vld [vmem:[%s1090_s1 + $0x398] sm:$0xff]  ;;  %v29_v2 = vld [vmem:[%s1091_s0 + $0x4] sm:$0xf]  ;;  %v543_v6 = vld [vmem:[%s1090_s1 + $0x310] sm:$0xff]  ;;  %v233_v11 = vperm.slane %v31_v3, 0  ;;  %v234_v13 = vperm.slane %v31_v3, 2 }
  0x2a   :  { %324 = vmatpush.msrb.mxu2 %v553_v14  ;;  %243 = vmatpush.msrb.mxu0 %v520_v16  ;;  %v559_v7 = vld [vmem:[%s1090_s1 + $0x390] sm:$0xff]  ;;  %v510_v8 = vld [vmem:[%s1090_s1 + $0x208] sm:$0xff]  ;;  %v231_v10 = vperm.slane %v29_v2, 0  ;;  %v232_v12 = vperm.slane %v29_v2, 2  ;;  %v313_v16 = vperm.slane %v29_v2, 1  ;;  %v427_v33 = vld [vmem:[%s1095_s5 + $0x78] sm:$0xff] }
  0x2b   :  { %344 = vmatpush.msrb.mxu3 %v569_v15  ;;  %263 = vmatpush.msrb.mxu1 %v536_v17  ;;  %v526_v9 = vld [vmem:[%s1090_s1 + $0x288] sm:$0xff]  ;;  %v315_v17 = vperm.slane %v31_v3, 1  ;;  %v424_v40 = vld [vmem:[%s1095_s5 + $0x60] sm:$0xff]  ;;  %v419_v53 = vld [vmem:[%s1095_s5 + $0x38] sm:$0xff] }
  0x2c   :  { %325 = vmatpush.msrb.mxu2 %v552_v18  ;;  %244 = vmatpush.msrb.mxu0 %v519_v20  ;;  %v542_v14 = vld [vmem:[%s1090_s1 + $0x308] sm:$0xff]  ;;  %v314_v18 = vperm.slane %v29_v2, 3  ;;  %v509_v20 = vld [vmem:[%s1090_s1 + $0x200] sm:$0xff] }
  0x2d   :  { %345 = vmatpush.msrb.mxu3 %v568_v19  ;;  %264 = vmatpush.msrb.mxu1 %v535_v21  ;;  %v558_v15 = vld [vmem:[%s1090_s1 + $0x388] sm:$0xff]  ;;  %v316_v19 = vperm.slane %v31_v3, 3  ;;  %v525_v21 = vld [vmem:[%s1090_s1 + $0x280] sm:$0xff] }
  0x2e   :  { %326 = vmatpush.msrb.mxu2 %v551_v22  ;;  %245 = vmatpush.msrb.mxu0 %v518_v24  ;;  %v541_v22 = vld [vmem:[%s1090_s1 + $0x300] sm:$0xff]  ;;  %v235_v24 = vsel %vm103_vm0, %v233_v11, %v231_v10 }
  0x2f   :  { %346 = vmatpush.msrb.mxu3 %v567_v23  ;;  %265 = vmatpush.msrb.mxu1 %v534_v25  ;;  %v557_v23 = vld [vmem:[%s1090_s1 + $0x380] sm:$0xff]  ;;  %v236_v25 = vsel %vm103_vm0, %v234_v13, %v232_v12 }
  0x30   :  { %327 = vmatpush.msrb.mxu2 %v550_v26  ;;  %246 = vmatpush.msrb.mxu0 %v517_v28  ;;  %v317_v26 = vsel %vm103_vm0, %v315_v17, %v313_v16  ;;  %v420_v51 = vld [vmem:[%s1095_s5 + $0x40] sm:$0xff] }
  0x31   :  { %347 = vmatpush.msrb.mxu3 %v566_v27  ;;  %266 = vmatpush.msrb.mxu1 %v533_v29  ;;  %v318_v27 = vsel %vm103_vm0, %v316_v19, %v314_v18  ;;  %v412_v10 = vld [vmem:[%s1095_s5] sm:$0xff] }
  0x32   :  { %328 = vmatpush.msrb.mxu2 %v549_v30  ;;  %247 = vmatpush.msrb.mxu0 %v516_v34 }
  0x33   :  { %348 = vmatpush.msrb.mxu3 %v565_v31  ;;  %267 = vmatpush.msrb.mxu1 %v532_v35 }
  0x34   :  { %329 = vmatpush.msrb.mxu2 %v548_v36  ;;  %248 = vmatpush.msrb.mxu0 %v515_v38  ;;  %v426_v36 = vld [vmem:[%s1095_s5 + $0x70] sm:$0xff]  ;;  %v425_v38 = vld [vmem:[%s1095_s5 + $0x68] sm:$0xff] }
  0x35   :  { %349 = vmatpush.msrb.mxu3 %v564_v37  ;;  %268 = vmatpush.msrb.mxu1 %v531_v39 }
  0x36   :  { %330 = vmatpush.msrb.mxu2 %v547_v42  ;;  %249 = vmatpush.msrb.mxu0 %v514_v44  ;;  %v423_v44 = vld [vmem:[%s1095_s5 + $0x58] sm:$0xff] }
  0x37   :  { %350 = vmatpush.msrb.mxu3 %v563_v43  ;;  %269 = vmatpush.msrb.mxu1 %v530_v45  ;;  %v422_v45 = vld [vmem:[%s1095_s5 + $0x50] sm:$0xff] }
  0x38   :  { %331 = vmatpush.msrb.mxu2 %v546_v48  ;;  %250 = vmatpush.msrb.mxu0 %v513_v55  ;;  %v573_v48 = vld [vmem:[%s1092_s2] ss:$0 sm:$0xff]  ;;  %v418_v55 = vld [vmem:[%s1095_s5 + $0x30] sm:$0xff] }
  0x39   :  { %351 = vmatpush.msrb.mxu3 %v562_v49  ;;  %172 = vmatmul.f32.vlgmr.msra.gmra.mxu2 %v152_v54  ;;  %v421_v49 = vld [vmem:[%s1095_s5 + $0x48] sm:$0xff] }
  0x3a   :  { %270 = vmatpush.msrb.mxu1 %v529_v56  ;;  %332 = vmatpush.msrb.mxu2 %v545_v57  ;;  %v417_v57 = vld [vmem:[%s1095_s5 + $0x28] sm:$0xff] }
  0x3b   :  { %352 = vmatpush.msrb.mxu3 %v561_v58  ;;  %124 = vmatmul.f32.vlgmr.msra.gmra.mxu0 %v104_v59 }
  0x3c   :  { %144 = vmatmul.f32.vlgmr.msra.gmra.mxu1 %v105_v60  ;;  %192 = vmatmul.f32.vlgmr.msra.gmra.mxu3 %v153_v61  ;;  %v416_v61 = vld [vmem:[%s1095_s5 + $0x20] sm:$0xff] }
  0x3d   :  { %251 = vmatpush.msrb.mxu0 %v512_v62  ;;  %271 = vmatpush.msrb.mxu1 %v528_v63 }
  0x3e   :  { %333 = vmatpush.msrb.mxu2 %v544_v0  ;;  %353 = vmatpush.msrb.mxu3 %v560_v1  ;;  %v415_v1 = vld [vmem:[%s1095_s5 + $0x18] sm:$0xff] }
  0x3f   :  { %252 = vmatpush.msrb.mxu0 %v511_v4  ;;  %272 = vmatpush.msrb.mxu1 %v527_v5  ;;  %v414_v4 = vld [vmem:[%s1095_s5 + $0x10] sm:$0xff] }
  0x40   :  { %334 = vmatpush.msrb.mxu2 %v543_v6  ;;  %354 = vmatpush.msrb.mxu3 %v559_v7  ;;  %v413_v7 = vld [vmem:[%s1095_s5 + $0x8] sm:$0xff] }
  0x41   :  { %253 = vmatpush.msrb.mxu0 %v510_v8  ;;  %273 = vmatpush.msrb.mxu1 %v526_v9 }
  0x42   :  { %335 = vmatpush.msrb.mxu2 %v542_v14  ;;  %355 = vmatpush.msrb.mxu3 %v558_v15  ;;  %v12_v15 = vstv %s1096_s6 }
  0x43   :  { %254 = vmatpush.msrb.mxu0 %v509_v20  ;;  %274 = vmatpush.msrb.mxu1 %v525_v21  ;;  %13 = vst [vmem:[#allocation2] sm:$0x1] %v12_v15 }
  0x44   :  { %336 = vmatpush.msrb.mxu2 %v541_v22  ;;  %356 = vmatpush.msrb.mxu3 %v557_v23 }
  0x45   :  { %255 = vmatmul.f32.vlgmr.msrb.gmra.mxu0 %v235_v24  ;;  %275 = vmatmul.f32.vlgmr.msrb.gmra.mxu1 %v236_v25 }
  0x46   :  { %337 = vmatmul.f32.vlgmr.msrb.gmra.mxu2 %v317_v26  ;;  %357 = vmatmul.f32.vlgmr.msrb.gmra.mxu3 %v318_v27  ;;  %v574_v27 = vld [vmem:[%s1093_s3] ss:$0 sm:$0xff] }
  0x47   :  { %432 = vmatpush.msra.mxu0 %v427_v33 }
  0x49   :  { %433 = vmatpush.msra.mxu0 %v426_v36 }
  0x4a   :  { %v576_v33 = vld [vmem:[#allocation2] ss:$0 sm:$0xff] }
  0x4b   :  { %434 = vmatpush.msra.mxu0 %v425_v38 }
  0x4d   :  { %435 = vmatpush.msra.mxu0 %v424_v40 }
  0x4f   :  { %436 = vmatpush.msra.mxu0 %v423_v44 }
  0x51   :  { %437 = vmatpush.msra.mxu0 %v422_v45 }
  0x53   :  { %438 = vmatpush.msra.mxu0 %v421_v49 }
  0x55   :  { %439 = vmatpush.msra.mxu0 %v420_v51 }
  0x57   :  { %440 = vmatpush.msra.mxu0 %v419_v53 }
  0x59   :  { %441 = vmatpush.msra.mxu0 %v418_v55 }
  0x5b   :  { %442 = vmatpush.msra.mxu0 %v417_v57 }
  0x5d   :  { %443 = vmatpush.msra.mxu0 %v416_v61 }
  0x5f   :  { %444 = vmatpush.msra.mxu0 %v415_v1 }
  0x61   :  { %445 = vmatpush.msra.mxu0 %v414_v4 }
  0x63   :  { %446 = vmatpush.msra.mxu0 %v413_v7 }
  0x65   :  { %447 = vmatpush.msra.mxu0 %v412_v10 }
  0xb8   :  { %v125_v28 = vpop.f32.mrf.mxu0 }
  0xb9   :  { %v145_v29 = vpop.f32.mrf.mxu1 }
  0xba   :  { %v146_v31 = vadd.f32 %v145_v29, %v125_v28 }
  0xbc   :  { %v173_v32 = vpop.f32.mrf.mxu2 }
  0xbd   :  { %v174_v37 = vadd.f32 %v173_v32, %v146_v31 }
  0xbf   :  { %v193_v30 = vpop.f32.mrf.mxu3 }
  0xc0   :  { %v194_v41 = vadd.f32 %v193_v30, %v174_v37  ;;  %v575_v30 = vld [vmem:[%s1094_s4] ss:$0 sm:$0xff] }
  0xc2   :  { %v256_v34 = vpop.f32.mrf.mxu0  ;;  %v276_v35 = vpop.f32.mrf.mxu1 }
  0xc3   :  { %v277_v39 = vadd.f32 %v276_v35, %v256_v34 }
  0xc5   :  { %v279_v46 = vadd.f32 %v277_v39, %v194_v41 }
  0xc9   :  { %v338_v42 = vpop.f32.mrf.mxu2  ;;  %v358_v43 = vpop.f32.mrf.mxu3 }
  0xca   :  { %v359_v47 = vadd.f32 %v358_v43, %v338_v42 }
  0xcc   :  { %v361_v50 = vadd.f32 %v359_v47, %v279_v46 }
  0xce   :  { %v366_v52 = vadd.f32 %v573_v48, %v361_v50 }
  0xd0   :  { %v367_v54 = vmul.f32 0.2, %v366_v52 }
  0xd2   :  { %v368_v56 = vmax.f32 %v366_v52, %v367_v54 }
  0xd4   :  { %v370_v58 = vsel %vm369_vm1, %v368_v56, 0.0  ;;  %v377_v59 = vmul.f32 %v368_v56, %v368_v56 }
  0xd5   :  { %v371_v60 = vrot.slane %v370_v58, 4 }
  0xd6   :  { %v378_v62 = vsel %vm369_vm1, %v377_v59, 0.0 }
  0xd7   :  { %v372_v63 = vadd.f32 %v371_v60, %v370_v58  ;;  %v379_v0 = vrot.slane %v378_v62, 4 }
  0xd9   :  { %v373_v2 = vrot.slane %v372_v63, 2  ;;  %v380_v3 = vadd.f32 %v379_v0, %v378_v62 }
  0xdb   :  { %v374_v5 = vadd.f32 %v373_v2, %v372_v63  ;;  %v381_v6 = vrot.slane %v380_v3, 2 }
  0xdd   :  { %v375_v8 = vrot.slane %v374_v5, 1  ;;  %v382_v9 = vadd.f32 %v381_v6, %v380_v3 }
  0xdf   :  { %v376_v11 = vadd.f32 %v375_v8, %v374_v5  ;;  %v383_v12 = vrot.slane %v382_v9, 1 }
  0xe1   :  { %v384_v13 = vadd.f32 %v383_v12, %v382_v9  ;;  %v385_v14 = vmul.f32 0.5, %v376_v11 }
  0xe3   :  { %v386_v16 = vmul.f32 0.5, %v384_v13  ;;  %v387_v17 = vmul.f32 %v385_v14, %v385_v14  ;;  %v389_v26 = vsub.f32 %v368_v56, %v385_v14 }
  0xe5   :  { %v388_v18 = vsub.f32 %v386_v16, %v387_v17 }
  0xe7   :  { %v390_v19 = vadd.f32 0.8, %v388_v18 }
  0xe9   :  { %577 = vrsqrt.f32 %v390_v19  ;;  %vm397_vm3 = vweird.f32 %v390_v19 }
  0xef   :  { %v578_v20 = vpop.eup %577 }
  0xf0   :  { %v392_v21 = vmul.f32 %v578_v20, %v390_v19  ;;  %vm398_vm2 = vweird.f32 %v578_v20 }
  0xf1   :  { %vm399_vm4 = vmor %vm397_vm3, %vm398_vm2 }
  0xf2   :  { %v393_v22 = vmul.f32 %v578_v20, %v392_v21 }
  0xf4   :  { %v394_v23 = vmul.f32 0.5, %v393_v22 }
  0xf6   :  { %v395_v24 = vsub.f32 1.5, %v394_v23 }
  0xf8   :  { %v396_v25 = vmul.f32 %v578_v20, %v395_v24 }
  0xfa   :  { %v400_v28 = vsel %vm399_vm4, %v578_v20, %v396_v25 }
  0xfb   :  { %v401_v29 = vmul.f32 %v400_v28, %v389_v26 }
  0xfd   :  { %v406_v31 = vmul.f32 %v574_v27, %v401_v29 }
  0xff   :  { %v411_v32 = vadd.f32 %v575_v30, %v406_v31 }
 0x101   :  { %448 = vmatmul.f32.vlgmr.msra.gmra.mxu0 %v411_v32 }
 0x17e   :  { %v449_v34 = vpop.f32.mrf.mxu0 }
 0x17f   :  { %v450_v35 = vadd.f32 %v576_v33, %v449_v34 }
 0x181   :  { %v452_v36 = vsub.f32 0.0, %v450_v35 }
 0x183   :  { %v453_v37 = vmul.f32 1.442695, %v452_v36 }
 0x185   :  { %579 = vpow2.f32 %v453_v37 }
 0x18b   :  { %v580_v38 = vpop.eup %579 }
 0x18c   :  { %v455_v39 = vadd.f32 1.0, %v580_v38 }
 0x18e   :  { %581 = vrcp.f32 %v455_v39  ;;  %v467_v43 = vand.u32 2147483648, %v455_v39  ;;  %v465_v45 = vand.u32 2147483647, %v455_v39  ;;  %vm461_vm6 = vweird.f32 %v455_v39 }
 0x190   :  { %v468_v47 = vor.u32 1.1754944e-38, %v467_v43  ;;  %vm466_vm9 = vcmp.eq.f32.partialorder %v465_v45, 8.507059e+37 }
 0x194   :  { %v582_v40 = vpop.eup %581 }
 0x195   :  { %v457_v41 = vmul.f32 %v582_v40, %v455_v39  ;;  %vm462_vm5 = vweird.f32 %v582_v40 }
 0x196   :  { %vm463_vm7 = vmor %vm461_vm6, %vm462_vm5 }
 0x197   :  { %v458_v42 = vsub.f32 1.0, %v457_v41 }
 0x199   :  { %v459_v44 = vmul.f32 %v582_v40, %v458_v42 }
 0x19b   :  { %v460_v46 = vadd.f32 %v582_v40, %v459_v44 }
 0x19d   :  { %v464_v48 = vsel %vm463_vm7, %v582_v40, %v460_v46 }
 0x19e   :  { %v469_v49 = vsel %vm466_vm9, %v468_v47, %v464_v48 }
 0x19f   :  { %472 = vst.msk [vmem:[%s1097_s7] sm:$0x3] %vm471_vm8, %v469_v49 }

</bundles_post_ra>
